<compile_context>
chip_gen: v6e
topology: v6e:2x2x1
jax: 0.10.0
libtpu: 0.0.40
codegen_flags: <defaults>
</compile_context>

<pallas_src>
import math
import numpy as np
import jax
import jax.numpy as jnp
from jax.experimental import pallas as pl
from jax.experimental.pallas import tpu as pltpu


# ----------------------------- config -----------------------------------------
class CNNConfig:
    channels = 4
    height = 16
    width = 16
    conv_architecture = [8, 16]   # output channels per conv layer
    kernel_sizes = [3, 3]
    pool_kernel = [2, 2]
    architecture = [32, 10]       # fc layer widths (last = num classes)


# ----------------------------- parameter construction (torch layouts) ----------
def make_params(config, key):
    params = {"conv": [], "fc": []}
    in_ch = config.channels
    h, w = config.height, config.width
    for i, out_ch in enumerate(config.conv_architecture):
        k = config.kernel_sizes[i]
        key, k1, k2 = jax.random.split(key, 3)
        fan_in = in_ch * k * k
        cw = jax.random.normal(k1, (out_ch, in_ch, k, k), jnp.float32) / math.sqrt(fan_in)
        cb = jax.random.normal(k2, (out_ch,), jnp.float32) * 0.01
        params["conv"].append((cw, cb))
        # shape bookkeeping exactly as in the PyTorch __init__ (ceil((h-k)/p));
        # the real pipeline uses floor((h-k+1)/p) — they coincide for this config
        # (prep_params asserts consistency).
        h = math.ceil((h - k) / config.pool_kernel[i])
        w = math.ceil((w - k) / config.pool_kernel[i])
        in_ch = out_ch
    fc_in = config.conv_architecture[-1] * h * w
    dims = [fc_in] + list(config.architecture)
    for i in range(len(dims) - 1):
        key, k1, k2 = jax.random.split(key, 3)
        fw = jax.random.normal(k1, (dims[i + 1], dims[i]), jnp.float32) / math.sqrt(dims[i])
        fb = jax.random.normal(k2, (dims[i + 1],), jnp.float32) * 0.01
        params["fc"].append((fw, fb))
    return params


# ----------------------------- one-time weight prep (outside jit) ---------------
def prep_params(params, config):
    """Expand conv weights to block-Toeplitz matmul form, fold the NCHW flatten into
    fc[0], pre-transpose fc weights. Returns (static shape plan, flat operand list)."""
    H, W, Cin = config.height, config.width, config.channels
    conv_plan, ops = [], []
    for li, (cw, cb) in enumerate(params["conv"]):
        K = config.kernel_sizes[li]
        P = config.pool_kernel[li]
        Cout = int(cw.shape[0])
        Ho, Wo = H - K + 1, W - K + 1          # valid conv, stride 1
        Hp, Wp = Ho // P, Wo // P              # MaxPool2d default: stride=P, floor mode
        conv_plan.append(dict(Hin=H, Win=W, Cin=Cin, K=K, Ho=Ho, Wo=Wo,
                              Cout=Cout, P=P, Hp=Hp, Wp=Wp))
        wt = np.asarray(cw, np.float32)        # torch layout (Cout, Cin, KH, KW)
        # wexp[ki, w*Cin + c, wo*Cout + d] = wt[d, c, ki, w - wo]  for 0 <= w-wo < K
        wexp = np.zeros((K, W * Cin, Wo * Cout), np.float32)
        for ki in range(K):
            for wo in range(Wo):
                for kj in range(K):
                    wc = wo + kj
                    wexp[ki, wc * Cin:(wc + 1) * Cin,
                         wo * Cout:(wo + 1) * Cout] = wt[:, :, ki, kj].T
        bexp = np.tile(np.asarray(cb, np.float32).reshape(1, Cout), (1, Wo))  # (1, Wo*Cout)
        ops += [jnp.asarray(wexp), jnp.asarray(bexp)]
        H, W, Cin = Hp, Wp, Cout

    Hp, Wp, Co = H, W, Cin
    flat = Hp * Wp * Co
    assert params["fc"][0][0].shape[1] == flat, (
        "module's ceil-based fc_in bookkeeping diverged from the actual conv output size")
    # NHWC-flat index j = hp*Wp*Co + wp*Co + c  ->  NCHW-flat index c*Hp*Wp + hp*Wp + wp
    perm = np.array([c * (Hp * Wp) + hp * Wp + wp
                     for hp in range(Hp) for wp in range(Wp) for c in range(Co)],
                    dtype=np.int64)
    for fi, (fw, fb) in enumerate(params["fc"]):
        fwm = np.asarray(fw, np.float32).T          # (in, out)
        if fi == 0:
            fwm = fwm[perm, :]                      # absorb PyTorch NCHW flatten order
        ops += [jnp.asarray(fwm),
                jnp.asarray(np.asarray(fb, np.float32).reshape(1, -1))]
    plan = {"conv": conv_plan, "n_fc": len(params["fc"]), "flat": flat}
    return plan, ops


# ----------------------------- fused Pallas kernel -------------------------------
def make_fused_kernel(conv_plan, n_fc, n_batch):
    def kernel(*refs):
        i = 0
        x_ref = refs[i]; i += 1
        cw, cb = [], []
        for _ in conv_plan:
            cw.append(refs[i]); cb.append(refs[i + 1]); i += 2
        fw, fb = [], []
        for _ in range(n_fc):
            fw.append(refs[i]); fb.append(refs[i + 1]); i += 2
        out_ref = refs[i]; i += 1
        scr = list(refs[i:])

        cur = x_ref                                   # layout (N*Hin, Win*Cin)
        s = 0
        for li, L in enumerate(conv_plan):
            K, Hin, Ho, Wo = L["K"], L["Hin"], L["Ho"], L["Wo"]
            Co, P, Hp, Wp = L["Cout"], L["P"], L["Hp"], L["Wp"]
            acc_ref, wpool_ref, pool_ref = scr[s], scr[s + 1], scr[s + 2]
            s += 3
            bias = cb[li][...]                        # (1, Wo*Co)
            # conv + bias + ReLU: K shifted rank-2 matmuls per sample (MXU), VMEM-resident
            for n in range(n_batch):
                acc = jnp.dot(cur[pl.ds(n * Hin, Ho), :], cw[li][0, :, :],
                              preferred_element_type=jnp.float32)
                for ki in range(1, K):
                    acc = acc + jnp.dot(cur[pl.ds(n * Hin + ki, Ho), :], cw[li][ki, :, :],
                                        preferred_element_type=jnp.float32)
                acc_ref[pl.ds(n * Ho, Ho), :] = jnp.maximum(acc + bias, 0.0)
            # max-pool along W: max over P adjacent lane groups of width Co
            for wp in range(Wp):
                m = acc_ref[:, (P * wp) * Co:(P * wp + 1) * Co]
                for dj in range(1, P):
                    m = jnp.maximum(
                        m, acc_ref[:, (P * wp + dj) * Co:(P * wp + dj + 1) * Co])
                wpool_ref[:, wp * Co:(wp + 1) * Co] = m
            # max-pool along H: max over P adjacent rows (floor mode drops leftovers)
            for n in range(n_batch):
                for hp in range(Hp):
                    r = wpool_ref[pl.ds(n * Ho + P * hp, 1), :]
                    for di in range(1, P):
                        r = jnp.maximum(r, wpool_ref[pl.ds(n * Ho + P * hp + di, 1), :])
                    pool_ref[pl.ds(n * Hp + hp, 1), :] = r
            cur = pool_ref

        # flatten per sample in NHWC order (NCHW permutation already folded into fw[0])
        Llast = conv_plan[-1]
        Hp, Wp, Co = Llast["Hp"], Llast["Wp"], Llast["Cout"]
        row_w = Wp * Co
        z_ref = scr[s]
        for n in range(n_batch):
            for hp in range(Hp):
                z_ref[pl.ds(n, 1), hp * row_w:(hp + 1) * row_w] = \
                    cur[pl.ds(n * Hp + hp, 1), :]

        # fc stack: every Linear is followed by ReLU (including the last, as in the module)
        z = z_ref[...]
        for fi in range(n_fc):
            z = jnp.dot(z, fw[fi][...], preferred_element_type=jnp.float32) + fb[fi][...]
            z = jnp.maximum(z, 0.0)
        out_ref[...] = z.astype(out_ref.dtype)

    return kernel


def fused_forward(x_nchw, plan, ops, num_classes):
    N, C, H, W = x_nchw.shape
    # NCHW -> (N*H, W*C): the only XLA op outside the single fused kernel.
    x2d = jnp.transpose(x_nchw, (0, 2, 3, 1)).reshape(N * H, W * C).astype(jnp.float32)
    operands = [x2d] + list(ops)

    def full_spec(shape):
        zeros = (0,) * len(shape)
        return pl.BlockSpec(shape, lambda i: zeros)

    in_specs = [full_spec(op.shape) for op in operands]
    scratch_shapes = []
    for L in plan["conv"]:
        scratch_shapes.append(pltpu.VMEM((N * L["Ho"], L["Wo"] * L["Cout"]), jnp.float32))
        scratch_shapes.append(pltpu.VMEM((N * L["Ho"], L["Wp"] * L["Cout"]), jnp.float32))
        scratch_shapes.append(pltpu.VMEM((N * L["Hp"], L["Wp"] * L["Cout"]), jnp.float32))
    scratch_shapes.append(pltpu.VMEM((N, plan["flat"]), jnp.float32))

    kernel = make_fused_kernel(plan["conv"], plan["n_fc"], N)
    return pl.pallas_call(
        kernel,
        out_shape=jax.ShapeDtypeStruct((N, num_classes), jnp.float32),
        grid=(1,),
        in_specs=in_specs,
        out_specs=pl.BlockSpec((N, num_classes), lambda i: (0, 0)),
        scratch_shapes=scratch_shapes,
        compiler_params=pltpu.CompilerParams(dimension_semantics=("arbitrary",)),
    )(*operands)


# ----------------------------- main ----------------------------------------------
if __name__ == "__main__":
    config = CNNConfig()
    key = jax.random.PRNGKey(0)
    key, kx, kp = jax.random.split(key, 3)

    # PyTorch-style NCHW input: (batch=2, channels=4, H=16, W=16)
    x = jax.random.normal(kx, (2, config.channels, config.height, config.width),
                          jnp.float32)
    params = make_params(config, kp)
    plan, ops = prep_params(params, config)    # one-time weight expansion, outside jit

    num_classes = config.architecture[-1]
    fwd = jax.jit(lambda xx: fused_forward(xx, plan, ops, num_classes))
    logits = fwd(x)
    jax.block_until_ready(logits)

    assert logits.shape == (2, num_classes), logits.shape
    assert logits.dtype == jnp.float32
    print("KERNEL_OK")
</pallas_src>

<mosaic_0001>
module attributes {stable_mosaic.version = 11 : i64} {
  func.func @kernel(%arg0: i32, %arg1: memref<32x64xf32, #tpu.memory_space<vmem>>, %arg2: memref<3x64x112xf32, #tpu.memory_space<vmem>>, %arg3: memref<1x112xf32, #tpu.memory_space<vmem>>, %arg4: memref<3x56x80xf32, #tpu.memory_space<vmem>>, %arg5: memref<1x80xf32, #tpu.memory_space<vmem>>, %arg6: memref<64x32xf32, #tpu.memory_space<vmem>>, %arg7: memref<1x32xf32, #tpu.memory_space<vmem>>, %arg8: memref<32x10xf32, #tpu.memory_space<vmem>>, %arg9: memref<1x10xf32, #tpu.memory_space<vmem>>, %arg10: memref<2x10xf32, #tpu.memory_space<vmem>>, %arg11: memref<28x112xf32, #tpu.memory_space<vmem>>, %arg12: memref<28x56xf32, #tpu.memory_space<vmem>>, %arg13: memref<14x56xf32, #tpu.memory_space<vmem>>, %arg14: memref<10x80xf32, #tpu.memory_space<vmem>>, %arg15: memref<10x32xf32, #tpu.memory_space<vmem>>, %arg16: memref<4x32xf32, #tpu.memory_space<vmem>>, %arg17: memref<2x64xf32, #tpu.memory_space<vmem>>) attributes {dimension_semantics = [#tpu.dimension_semantics<arbitrary>], iteration_bounds = array<i64: 1>, scalar_prefetch = 0 : i64, scratch_operands = 7 : i64, tpu.core_type = #tpu.core_type<tc>, window_params = [{pipeline_mode = #tpu.pipeline_mode<synchronous>, transform_indices = @transform_0, window_bounds = array<i64: 32, 64>}, {pipeline_mode = #tpu.pipeline_mode<synchronous>, transform_indices = @transform_1, window_bounds = array<i64: 3, 64, 112>}, {pipeline_mode = #tpu.pipeline_mode<synchronous>, transform_indices = @transform_2, window_bounds = array<i64: 1, 112>}, {pipeline_mode = #tpu.pipeline_mode<synchronous>, transform_indices = @transform_3, window_bounds = array<i64: 3, 56, 80>}, {pipeline_mode = #tpu.pipeline_mode<synchronous>, transform_indices = @transform_4, window_bounds = array<i64: 1, 80>}, {pipeline_mode = #tpu.pipeline_mode<synchronous>, transform_indices = @transform_5, window_bounds = array<i64: 64, 32>}, {pipeline_mode = #tpu.pipeline_mode<synchronous>, transform_indices = @transform_6, window_bounds = array<i64: 1, 32>}, {pipeline_mode = #tpu.pipeline_mode<synchronous>, transform_indices = @transform_7, window_bounds = array<i64: 32, 10>}, {pipeline_mode = #tpu.pipeline_mode<synchronous>, transform_indices = @transform_8, window_bounds = array<i64: 1, 10>}, {pipeline_mode = #tpu.pipeline_mode<synchronous>, transform_indices = @transform_9, window_bounds = array<i64: 2, 10>}]} {
    %c0 = arith.constant 0 : index
    %c0_0 = arith.constant 0 : index
    %0 = vector.load %arg3[%c0, %c0_0] : memref<1x112xf32, #tpu.memory_space<vmem>>, vector<1x112xf32>
    %c0_1 = arith.constant 0 : index
    %c0_2 = arith.constant 0 : index
    %1 = vector.load %arg1[%c0_1, %c0_2] : memref<32x64xf32, #tpu.memory_space<vmem>>, vector<14x64xf32>
    %c0_3 = arith.constant 0 : index
    %c0_4 = arith.constant 0 : index
    %c0_5 = arith.constant 0 : index
    %2 = vector.load %arg2[%c0_3, %c0_4, %c0_5] : memref<3x64x112xf32, #tpu.memory_space<vmem>>, vector<1x64x112xf32>
    %3 = vector.shape_cast %2 : vector<1x64x112xf32> to vector<64x112xf32>
    %cst = arith.constant dense<0.000000e+00> : vector<14x112xf32>
    %4 = tpu.matmul %1, %3, %cst {dimension_numbers = #tpu.dot_dimension_numbers<[1], [0], [0], [1], [0, 0, 1, 1], [], []>} : vector<14x64xf32>, vector<64x112xf32>, vector<14x112xf32> -> vector<14x112xf32>
    %c1 = arith.constant 1 : index
    %c0_6 = arith.constant 0 : index
    %5 = vector.load %arg1[%c1, %c0_6] : memref<32x64xf32, #tpu.memory_space<vmem>>, vector<14x64xf32>
    %c1_7 = arith.constant 1 : index
    %c0_8 = arith.constant 0 : index
    %c0_9 = arith.constant 0 : index
    %6 = vector.load %arg2[%c1_7, %c0_8, %c0_9] : memref<3x64x112xf32, #tpu.memory_space<vmem>>, vector<1x64x112xf32>
    %7 = vector.shape_cast %6 : vector<1x64x112xf32> to vector<64x112xf32>
    %cst_10 = arith.constant dense<0.000000e+00> : vector<14x112xf32>
    %8 = tpu.matmul %5, %7, %cst_10 {dimension_numbers = #tpu.dot_dimension_numbers<[1], [0], [0], [1], [0, 0, 1, 1], [], []>} : vector<14x64xf32>, vector<64x112xf32>, vector<14x112xf32> -> vector<14x112xf32>
    %9 = arith.addf %4, %8 : vector<14x112xf32>
    %c2 = arith.constant 2 : index
    %c0_11 = arith.constant 0 : index
    %10 = vector.load %arg1[%c2, %c0_11] : memref<32x64xf32, #tpu.memory_space<vmem>>, vector<14x64xf32>
    %c2_12 = arith.constant 2 : index
    %c0_13 = arith.constant 0 : index
    %c0_14 = arith.constant 0 : index
    %11 = vector.load %arg2[%c2_12, %c0_13, %c0_14] : memref<3x64x112xf32, #tpu.memory_space<vmem>>, vector<1x64x112xf32>
    %12 = vector.shape_cast %11 : vector<1x64x112xf32> to vector<64x112xf32>
    %cst_15 = arith.constant dense<0.000000e+00> : vector<14x112xf32>
    %13 = tpu.matmul %10, %12, %cst_15 {dimension_numbers = #tpu.dot_dimension_numbers<[1], [0], [0], [1], [0, 0, 1, 1], [], []>} : vector<14x64xf32>, vector<64x112xf32>, vector<14x112xf32> -> vector<14x112xf32>
    %14 = arith.addf %9, %13 : vector<14x112xf32>
    %15 = vector.broadcast %0 : vector<1x112xf32> to vector<14x112xf32>
    %16 = arith.addf %14, %15 : vector<14x112xf32>
    %cst_16 = arith.constant 0.000000e+00 : f32
    %17 = vector.broadcast %cst_16 : f32 to vector<14x112xf32>
    %18 = arith.maximumf %16, %17 : vector<14x112xf32>
    %c0_17 = arith.constant 0 : index
    %c0_18 = arith.constant 0 : index
    %19 = vector.load %arg11[%c0_17, %c0_18] : memref<28x112xf32, #tpu.memory_space<vmem>>, vector<14x112xf32>
    tpu.vector_store %arg11[%c0_17, %c0_18], %18 {strides = array<i32>} : memref<28x112xf32, #tpu.memory_space<vmem>>, vector<14x112xf32>,
    %c16 = arith.constant 16 : index
    %c0_19 = arith.constant 0 : index
    %20 = vector.load %arg1[%c16, %c0_19] : memref<32x64xf32, #tpu.memory_space<vmem>>, vector<14x64xf32>
    %c0_20 = arith.constant 0 : index
    %c0_21 = arith.constant 0 : index
    %c0_22 = arith.constant 0 : index
    %21 = vector.load %arg2[%c0_20, %c0_21, %c0_22] : memref<3x64x112xf32, #tpu.memory_space<vmem>>, vector<1x64x112xf32>
    %22 = vector.shape_cast %21 : vector<1x64x112xf32> to vector<64x112xf32>
    %cst_23 = arith.constant dense<0.000000e+00> : vector<14x112xf32>
    %23 = tpu.matmul %20, %22, %cst_23 {dimension_numbers = #tpu.dot_dimension_numbers<[1], [0], [0], [1], [0, 0, 1, 1], [], []>} : vector<14x64xf32>, vector<64x112xf32>, vector<14x112xf32> -> vector<14x112xf32>
    %c17 = arith.constant 17 : index
    %c0_24 = arith.constant 0 : index
    %24 = vector.load %arg1[%c17, %c0_24] : memref<32x64xf32, #tpu.memory_space<vmem>>, vector<14x64xf32>
    %c1_25 = arith.constant 1 : index
    %c0_26 = arith.constant 0 : index
    %c0_27 = arith.constant 0 : index
    %25 = vector.load %arg2[%c1_25, %c0_26, %c0_27] : memref<3x64x112xf32, #tpu.memory_space<vmem>>, vector<1x64x112xf32>
    %26 = vector.shape_cast %25 : vector<1x64x112xf32> to vector<64x112xf32>
    %cst_28 = arith.constant dense<0.000000e+00> : vector<14x112xf32>
    %27 = tpu.matmul %24, %26, %cst_28 {dimension_numbers = #tpu.dot_dimension_numbers<[1], [0], [0], [1], [0, 0, 1, 1], [], []>} : vector<14x64xf32>, vector<64x112xf32>, vector<14x112xf32> -> vector<14x112xf32>
    %28 = arith.addf %23, %27 : vector<14x112xf32>
    %c18 = arith.constant 18 : index
    %c0_29 = arith.constant 0 : index
    %29 = vector.load %arg1[%c18, %c0_29] : memref<32x64xf32, #tpu.memory_space<vmem>>, vector<14x64xf32>
    %c2_30 = arith.constant 2 : index
    %c0_31 = arith.constant 0 : index
    %c0_32 = arith.constant 0 : index
    %30 = vector.load %arg2[%c2_30, %c0_31, %c0_32] : memref<3x64x112xf32, #tpu.memory_space<vmem>>, vector<1x64x112xf32>
    %31 = vector.shape_cast %30 : vector<1x64x112xf32> to vector<64x112xf32>
    %cst_33 = arith.constant dense<0.000000e+00> : vector<14x112xf32>
    %32 = tpu.matmul %29, %31, %cst_33 {dimension_numbers = #tpu.dot_dimension_numbers<[1], [0], [0], [1], [0, 0, 1, 1], [], []>} : vector<14x64xf32>, vector<64x112xf32>, vector<14x112xf32> -> vector<14x112xf32>
    %33 = arith.addf %28, %32 : vector<14x112xf32>
    %34 = vector.broadcast %0 : vector<1x112xf32> to vector<14x112xf32>
    %35 = arith.addf %33, %34 : vector<14x112xf32>
    %cst_34 = arith.constant 0.000000e+00 : f32
    %36 = vector.broadcast %cst_34 : f32 to vector<14x112xf32>
    %37 = arith.maximumf %35, %36 : vector<14x112xf32>
    %c14 = arith.constant 14 : index
    %c0_35 = arith.constant 0 : index
    %38 = vector.load %arg11[%c14, %c0_35] : memref<28x112xf32, #tpu.memory_space<vmem>>, vector<14x112xf32>
    tpu.vector_store %arg11[%c14, %c0_35], %37 {strides = array<i32>} : memref<28x112xf32, #tpu.memory_space<vmem>>, vector<14x112xf32>,
    %c0_36 = arith.constant 0 : index
    %c0_37 = arith.constant 0 : index
    %39 = vector.load %arg11[%c0_36, %c0_37] : memref<28x112xf32, #tpu.memory_space<vmem>>, vector<28x8xf32>
    %c0_38 = arith.constant 0 : index
    %c8 = arith.constant 8 : index
    %40 = vector.load %arg11[%c0_38, %c8] : memref<28x112xf32, #tpu.memory_space<vmem>>, vector<28x8xf32>
    %41 = arith.maximumf %39, %40 : vector<28x8xf32>
    %c0_39 = arith.constant 0 : index
    %c0_40 = arith.constant 0 : index
    %42 = vector.load %arg12[%c0_39, %c0_40] : memref<28x56xf32, #tpu.memory_space<vmem>>, vector<28x8xf32>
    tpu.vector_store %arg12[%c0_39, %c0_40], %41 {strides = array<i32>} : memref<28x56xf32, #tpu.memory_space<vmem>>, vector<28x8xf32>,
    %c0_41 = arith.constant 0 : index
    %c16_42 = arith.constant 16 : index
    %43 = vector.load %arg11[%c0_41, %c16_42] : memref<28x112xf32, #tpu.memory_space<vmem>>, vector<28x8xf32>
    %c0_43 = arith.constant 0 : index
    %c24 = arith.constant 24 : index
    %44 = vector.load %arg11[%c0_43, %c24] : memref<28x112xf32, #tpu.memory_space<vmem>>, vector<28x8xf32>
    %45 = arith.maximumf %43, %44 : vector<28x8xf32>
    %c0_44 = arith.constant 0 : index
    %c8_45 = arith.constant 8 : index
    %46 = vector.load %arg12[%c0_44, %c8_45] : memref<28x56xf32, #tpu.memory_space<vmem>>, vector<28x8xf32>
    tpu.vector_store %arg12[%c0_44, %c8_45], %45 {strides = array<i32>} : memref<28x56xf32, #tpu.memory_space<vmem>>, vector<28x8xf32>,
    %c0_46 = arith.constant 0 : index
    %c32 = arith.constant 32 : index
    %47 = vector.load %arg11[%c0_46, %c32] : memref<28x112xf32, #tpu.memory_space<vmem>>, vector<28x8xf32>
    %c0_47 = arith.constant 0 : index
    %c40 = arith.constant 40 : index
    %48 = vector.load %arg11[%c0_47, %c40] : memref<28x112xf32, #tpu.memory_space<vmem>>, vector<28x8xf32>
    %49 = arith.maximumf %47, %48 : vector<28x8xf32>
    %c0_48 = arith.constant 0 : index
    %c16_49 = arith.constant 16 : index
    %50 = vector.load %arg12[%c0_48, %c16_49] : memref<28x56xf32, #tpu.memory_space<vmem>>, vector<28x8xf32>
    tpu.vector_store %arg12[%c0_48, %c16_49], %49 {strides = array<i32>} : memref<28x56xf32, #tpu.memory_space<vmem>>, vector<28x8xf32>,
    %c0_50 = arith.constant 0 : index
    %c48 = arith.constant 48 : index
    %51 = vector.load %arg11[%c0_50, %c48] : memref<28x112xf32, #tpu.memory_space<vmem>>, vector<28x8xf32>
    %c0_51 = arith.constant 0 : index
    %c56 = arith.constant 56 : index
    %52 = vector.load %arg11[%c0_51, %c56] : memref<28x112xf32, #tpu.memory_space<vmem>>, vector<28x8xf32>
    %53 = arith.maximumf %51, %52 : vector<28x8xf32>
    %c0_52 = arith.constant 0 : index
    %c24_53 = arith.constant 24 : index
    %54 = vector.load %arg12[%c0_52, %c24_53] : memref<28x56xf32, #tpu.memory_space<vmem>>, vector<28x8xf32>
    tpu.vector_store %arg12[%c0_52, %c24_53], %53 {strides = array<i32>} : memref<28x56xf32, #tpu.memory_space<vmem>>, vector<28x8xf32>,
    %c0_54 = arith.constant 0 : index
    %c64 = arith.constant 64 : index
    %55 = vector.load %arg11[%c0_54, %c64] : memref<28x112xf32, #tpu.memory_space<vmem>>, vector<28x8xf32>
    %c0_55 = arith.constant 0 : index
    %c72 = arith.constant 72 : index
    %56 = vector.load %arg11[%c0_55, %c72] : memref<28x112xf32, #tpu.memory_space<vmem>>, vector<28x8xf32>
    %57 = arith.maximumf %55, %56 : vector<28x8xf32>
    %c0_56 = arith.constant 0 : index
    %c32_57 = arith.constant 32 : index
    %58 = vector.load %arg12[%c0_56, %c32_57] : memref<28x56xf32, #tpu.memory_space<vmem>>, vector<28x8xf32>
    tpu.vector_store %arg12[%c0_56, %c32_57], %57 {strides = array<i32>} : memref<28x56xf32, #tpu.memory_space<vmem>>, vector<28x8xf32>,
    %c0_58 = arith.constant 0 : index
    %c80 = arith.constant 80 : index
    %59 = vector.load %arg11[%c0_58, %c80] : memref<28x112xf32, #tpu.memory_space<vmem>>, vector<28x8xf32>
    %c0_59 = arith.constant 0 : index
    %c88 = arith.constant 88 : index
    %60 = vector.load %arg11[%c0_59, %c88] : memref<28x112xf32, #tpu.memory_space<vmem>>, vector<28x8xf32>
    %61 = arith.maximumf %59, %60 : vector<28x8xf32>
    %c0_60 = arith.constant 0 : index
    %c40_61 = arith.constant 40 : index
    %62 = vector.load %arg12[%c0_60, %c40_61] : memref<28x56xf32, #tpu.memory_space<vmem>>, vector<28x8xf32>
    tpu.vector_store %arg12[%c0_60, %c40_61], %61 {strides = array<i32>} : memref<28x56xf32, #tpu.memory_space<vmem>>, vector<28x8xf32>,
    %c0_62 = arith.constant 0 : index
    %c96 = arith.constant 96 : index
    %63 = vector.load %arg11[%c0_62, %c96] : memref<28x112xf32, #tpu.memory_space<vmem>>, vector<28x8xf32>
    %c0_63 = arith.constant 0 : index
    %c104 = arith.constant 104 : index
    %64 = vector.load %arg11[%c0_63, %c104] : memref<28x112xf32, #tpu.memory_space<vmem>>, vector<28x8xf32>
    %65 = arith.maximumf %63, %64 : vector<28x8xf32>
    %c0_64 = arith.constant 0 : index
    %c48_65 = arith.constant 48 : index
    %66 = vector.load %arg12[%c0_64, %c48_65] : memref<28x56xf32, #tpu.memory_space<vmem>>, vector<28x8xf32>
    tpu.vector_store %arg12[%c0_64, %c48_65], %65 {strides = array<i32>} : memref<28x56xf32, #tpu.memory_space<vmem>>, vector<28x8xf32>,
    %c0_66 = arith.constant 0 : index
    %c0_67 = arith.constant 0 : index
    %67 = vector.load %arg12[%c0_66, %c0_67] : memref<28x56xf32, #tpu.memory_space<vmem>>, vector<1x56xf32>
    %c1_68 = arith.constant 1 : index
    %c0_69 = arith.constant 0 : index
    %68 = vector.load %arg12[%c1_68, %c0_69] : memref<28x56xf32, #tpu.memory_space<vmem>>, vector<1x56xf32>
    %69 = arith.maximumf %67, %68 : vector<1x56xf32>
    %c0_70 = arith.constant 0 : index
    %c0_71 = arith.constant 0 : index
    %70 = vector.load %arg13[%c0_70, %c0_71] : memref<14x56xf32, #tpu.memory_space<vmem>>, vector<1x56xf32>
    tpu.vector_store %arg13[%c0_70, %c0_71], %69 {strides = array<i32>} : memref<14x56xf32, #tpu.memory_space<vmem>>, vector<1x56xf32>,
    %c2_72 = arith.constant 2 : index
    %c0_73 = arith.constant 0 : index
    %71 = vector.load %arg12[%c2_72, %c0_73] : memref<28x56xf32, #tpu.memory_space<vmem>>, vector<1x56xf32>
    %c3 = arith.constant 3 : index
    %c0_74 = arith.constant 0 : index
    %72 = vector.load %arg12[%c3, %c0_74] : memref<28x56xf32, #tpu.memory_space<vmem>>, vector<1x56xf32>
    %73 = arith.maximumf %71, %72 : vector<1x56xf32>
    %c1_75 = arith.constant 1 : index
    %c0_76 = arith.constant 0 : index
    %74 = vector.load %arg13[%c1_75, %c0_76] : memref<14x56xf32, #tpu.memory_space<vmem>>, vector<1x56xf32>
    tpu.vector_store %arg13[%c1_75, %c0_76], %73 {strides = array<i32>} : memref<14x56xf32, #tpu.memory_space<vmem>>, vector<1x56xf32>,
    %c4 = arith.constant 4 : index
    %c0_77 = arith.constant 0 : index
    %75 = vector.load %arg12[%c4, %c0_77] : memref<28x56xf32, #tpu.memory_space<vmem>>, vector<1x56xf32>
    %c5 = arith.constant 5 : index
    %c0_78 = arith.constant 0 : index
    %76 = vector.load %arg12[%c5, %c0_78] : memref<28x56xf32, #tpu.memory_space<vmem>>, vector<1x56xf32>
    %77 = arith.maximumf %75, %76 : vector<1x56xf32>
    %c2_79 = arith.constant 2 : index
    %c0_80 = arith.constant 0 : index
    %78 = vector.load %arg13[%c2_79, %c0_80] : memref<14x56xf32, #tpu.memory_space<vmem>>, vector<1x56xf32>
    tpu.vector_store %arg13[%c2_79, %c0_80], %77 {strides = array<i32>} : memref<14x56xf32, #tpu.memory_space<vmem>>, vector<1x56xf32>,
    %c6 = arith.constant 6 : index
    %c0_81 = arith.constant 0 : index
    %79 = vector.load %arg12[%c6, %c0_81] : memref<28x56xf32, #tpu.memory_space<vmem>>, vector<1x56xf32>
    %c7 = arith.constant 7 : index
    %c0_82 = arith.constant 0 : index
    %80 = vector.load %arg12[%c7, %c0_82] : memref<28x56xf32, #tpu.memory_space<vmem>>, vector<1x56xf32>
    %81 = arith.maximumf %79, %80 : vector<1x56xf32>
    %c3_83 = arith.constant 3 : index
    %c0_84 = arith.constant 0 : index
    %82 = vector.load %arg13[%c3_83, %c0_84] : memref<14x56xf32, #tpu.memory_space<vmem>>, vector<1x56xf32>
    tpu.vector_store %arg13[%c3_83, %c0_84], %81 {strides = array<i32>} : memref<14x56xf32, #tpu.memory_space<vmem>>, vector<1x56xf32>,
    %c8_85 = arith.constant 8 : index
    %c0_86 = arith.constant 0 : index
    %83 = vector.load %arg12[%c8_85, %c0_86] : memref<28x56xf32, #tpu.memory_space<vmem>>, vector<1x56xf32>
    %c9 = arith.constant 9 : index
    %c0_87 = arith.constant 0 : index
    %84 = vector.load %arg12[%c9, %c0_87] : memref<28x56xf32, #tpu.memory_space<vmem>>, vector<1x56xf32>
    %85 = arith.maximumf %83, %84 : vector<1x56xf32>
    %c4_88 = arith.constant 4 : index
    %c0_89 = arith.constant 0 : index
    %86 = vector.load %arg13[%c4_88, %c0_89] : memref<14x56xf32, #tpu.memory_space<vmem>>, vector<1x56xf32>
    tpu.vector_store %arg13[%c4_88, %c0_89], %85 {strides = array<i32>} : memref<14x56xf32, #tpu.memory_space<vmem>>, vector<1x56xf32>,
    %c10 = arith.constant 10 : index
    %c0_90 = arith.constant 0 : index
    %87 = vector.load %arg12[%c10, %c0_90] : memref<28x56xf32, #tpu.memory_space<vmem>>, vector<1x56xf32>
    %c11 = arith.constant 11 : index
    %c0_91 = arith.constant 0 : index
    %88 = vector.load %arg12[%c11, %c0_91] : memref<28x56xf32, #tpu.memory_space<vmem>>, vector<1x56xf32>
    %89 = arith.maximumf %87, %88 : vector<1x56xf32>
    %c5_92 = arith.constant 5 : index
    %c0_93 = arith.constant 0 : index
    %90 = vector.load %arg13[%c5_92, %c0_93] : memref<14x56xf32, #tpu.memory_space<vmem>>, vector<1x56xf32>
    tpu.vector_store %arg13[%c5_92, %c0_93], %89 {strides = array<i32>} : memref<14x56xf32, #tpu.memory_space<vmem>>, vector<1x56xf32>,
    %c12 = arith.constant 12 : index
    %c0_94 = arith.constant 0 : index
    %91 = vector.load %arg12[%c12, %c0_94] : memref<28x56xf32, #tpu.memory_space<vmem>>, vector<1x56xf32>
    %c13 = arith.constant 13 : index
    %c0_95 = arith.constant 0 : index
    %92 = vector.load %arg12[%c13, %c0_95] : memref<28x56xf32, #tpu.memory_space<vmem>>, vector<1x56xf32>
    %93 = arith.maximumf %91, %92 : vector<1x56xf32>
    %c6_96 = arith.constant 6 : index
    %c0_97 = arith.constant 0 : index
    %94 = vector.load %arg13[%c6_96, %c0_97] : memref<14x56xf32, #tpu.memory_space<vmem>>, vector<1x56xf32>
    tpu.vector_store %arg13[%c6_96, %c0_97], %93 {strides = array<i32>} : memref<14x56xf32, #tpu.memory_space<vmem>>, vector<1x56xf32>,
    %c14_98 = arith.constant 14 : index
    %c0_99 = arith.constant 0 : index
    %95 = vector.load %arg12[%c14_98, %c0_99] : memref<28x56xf32, #tpu.memory_space<vmem>>, vector<1x56xf32>
    %c15 = arith.constant 15 : index
    %c0_100 = arith.constant 0 : index
    %96 = vector.load %arg12[%c15, %c0_100] : memref<28x56xf32, #tpu.memory_space<vmem>>, vector<1x56xf32>
    %97 = arith.maximumf %95, %96 : vector<1x56xf32>
    %c7_101 = arith.constant 7 : index
    %c0_102 = arith.constant 0 : index
    %98 = vector.load %arg13[%c7_101, %c0_102] : memref<14x56xf32, #tpu.memory_space<vmem>>, vector<1x56xf32>
    tpu.vector_store %arg13[%c7_101, %c0_102], %97 {strides = array<i32>} : memref<14x56xf32, #tpu.memory_space<vmem>>, vector<1x56xf32>,
    %c16_103 = arith.constant 16 : index
    %c0_104 = arith.constant 0 : index
    %99 = vector.load %arg12[%c16_103, %c0_104] : memref<28x56xf32, #tpu.memory_space<vmem>>, vector<1x56xf32>
    %c17_105 = arith.constant 17 : index
    %c0_106 = arith.constant 0 : index
    %100 = vector.load %arg12[%c17_105, %c0_106] : memref<28x56xf32, #tpu.memory_space<vmem>>, vector<1x56xf32>
    %101 = arith.maximumf %99, %100 : vector<1x56xf32>
    %c8_107 = arith.constant 8 : index
    %c0_108 = arith.constant 0 : index
    %102 = vector.load %arg13[%c8_107, %c0_108] : memref<14x56xf32, #tpu.memory_space<vmem>>, vector<1x56xf32>
    tpu.vector_store %arg13[%c8_107, %c0_108], %101 {strides = array<i32>} : memref<14x56xf32, #tpu.memory_space<vmem>>, vector<1x56xf32>,
    %c18_109 = arith.constant 18 : index
    %c0_110 = arith.constant 0 : index
    %103 = vector.load %arg12[%c18_109, %c0_110] : memref<28x56xf32, #tpu.memory_space<vmem>>, vector<1x56xf32>
    %c19 = arith.constant 19 : index
    %c0_111 = arith.constant 0 : index
    %104 = vector.load %arg12[%c19, %c0_111] : memref<28x56xf32, #tpu.memory_space<vmem>>, vector<1x56xf32>
    %105 = arith.maximumf %103, %104 : vector<1x56xf32>
    %c9_112 = arith.constant 9 : index
    %c0_113 = arith.constant 0 : index
    %106 = vector.load %arg13[%c9_112, %c0_113] : memref<14x56xf32, #tpu.memory_space<vmem>>, vector<1x56xf32>
    tpu.vector_store %arg13[%c9_112, %c0_113], %105 {strides = array<i32>} : memref<14x56xf32, #tpu.memory_space<vmem>>, vector<1x56xf32>,
    %c20 = arith.constant 20 : index
    %c0_114 = arith.constant 0 : index
    %107 = vector.load %arg12[%c20, %c0_114] : memref<28x56xf32, #tpu.memory_space<vmem>>, vector<1x56xf32>
    %c21 = arith.constant 21 : index
    %c0_115 = arith.constant 0 : index
    %108 = vector.load %arg12[%c21, %c0_115] : memref<28x56xf32, #tpu.memory_space<vmem>>, vector<1x56xf32>
    %109 = arith.maximumf %107, %108 : vector<1x56xf32>
    %c10_116 = arith.constant 10 : index
    %c0_117 = arith.constant 0 : index
    %110 = vector.load %arg13[%c10_116, %c0_117] : memref<14x56xf32, #tpu.memory_space<vmem>>, vector<1x56xf32>
    tpu.vector_store %arg13[%c10_116, %c0_117], %109 {strides = array<i32>} : memref<14x56xf32, #tpu.memory_space<vmem>>, vector<1x56xf32>,
    %c22 = arith.constant 22 : index
    %c0_118 = arith.constant 0 : index
    %111 = vector.load %arg12[%c22, %c0_118] : memref<28x56xf32, #tpu.memory_space<vmem>>, vector<1x56xf32>
    %c23 = arith.constant 23 : index
    %c0_119 = arith.constant 0 : index
    %112 = vector.load %arg12[%c23, %c0_119] : memref<28x56xf32, #tpu.memory_space<vmem>>, vector<1x56xf32>
    %113 = arith.maximumf %111, %112 : vector<1x56xf32>
    %c11_120 = arith.constant 11 : index
    %c0_121 = arith.constant 0 : index
    %114 = vector.load %arg13[%c11_120, %c0_121] : memref<14x56xf32, #tpu.memory_space<vmem>>, vector<1x56xf32>
    tpu.vector_store %arg13[%c11_120, %c0_121], %113 {strides = array<i32>} : memref<14x56xf32, #tpu.memory_space<vmem>>, vector<1x56xf32>,
    %c24_122 = arith.constant 24 : index
    %c0_123 = arith.constant 0 : index
    %115 = vector.load %arg12[%c24_122, %c0_123] : memref<28x56xf32, #tpu.memory_space<vmem>>, vector<1x56xf32>
    %c25 = arith.constant 25 : index
    %c0_124 = arith.constant 0 : index
    %116 = vector.load %arg12[%c25, %c0_124] : memref<28x56xf32, #tpu.memory_space<vmem>>, vector<1x56xf32>
    %117 = arith.maximumf %115, %116 : vector<1x56xf32>
    %c12_125 = arith.constant 12 : index
    %c0_126 = arith.constant 0 : index
    %118 = vector.load %arg13[%c12_125, %c0_126] : memref<14x56xf32, #tpu.memory_space<vmem>>, vector<1x56xf32>
    tpu.vector_store %arg13[%c12_125, %c0_126], %117 {strides = array<i32>} : memref<14x56xf32, #tpu.memory_space<vmem>>, vector<1x56xf32>,
    %c26 = arith.constant 26 : index
    %c0_127 = arith.constant 0 : index
    %119 = vector.load %arg12[%c26, %c0_127] : memref<28x56xf32, #tpu.memory_space<vmem>>, vector<1x56xf32>
    %c27 = arith.constant 27 : index
    %c0_128 = arith.constant 0 : index
    %120 = vector.load %arg12[%c27, %c0_128] : memref<28x56xf32, #tpu.memory_space<vmem>>, vector<1x56xf32>
    %121 = arith.maximumf %119, %120 : vector<1x56xf32>
    %c13_129 = arith.constant 13 : index
    %c0_130 = arith.constant 0 : index
    %122 = vector.load %arg13[%c13_129, %c0_130] : memref<14x56xf32, #tpu.memory_space<vmem>>, vector<1x56xf32>
    tpu.vector_store %arg13[%c13_129, %c0_130], %121 {strides = array<i32>} : memref<14x56xf32, #tpu.memory_space<vmem>>, vector<1x56xf32>,
    %c0_131 = arith.constant 0 : index
    %c0_132 = arith.constant 0 : index
    %123 = vector.load %arg5[%c0_131, %c0_132] : memref<1x80xf32, #tpu.memory_space<vmem>>, vector<1x80xf32>
    %c0_133 = arith.constant 0 : index
    %c0_134 = arith.constant 0 : index
    %124 = vector.load %arg13[%c0_133, %c0_134] : memref<14x56xf32, #tpu.memory_space<vmem>>, vector<5x56xf32>
    %c0_135 = arith.constant 0 : index
    %c0_136 = arith.constant 0 : index
    %c0_137 = arith.constant 0 : index
    %125 = vector.load %arg4[%c0_135, %c0_136, %c0_137] : memref<3x56x80xf32, #tpu.memory_space<vmem>>, vector<1x56x80xf32>
    %126 = vector.shape_cast %125 : vector<1x56x80xf32> to vector<56x80xf32>
    %cst_138 = arith.constant dense<0.000000e+00> : vector<5x80xf32>
    %127 = tpu.matmul %124, %126, %cst_138 {dimension_numbers = #tpu.dot_dimension_numbers<[1], [0], [0], [1], [0, 0, 1, 1], [], []>} : vector<5x56xf32>, vector<56x80xf32>, vector<5x80xf32> -> vector<5x80xf32>
    %c1_139 = arith.constant 1 : index
    %c0_140 = arith.constant 0 : index
    %128 = vector.load %arg13[%c1_139, %c0_140] : memref<14x56xf32, #tpu.memory_space<vmem>>, vector<5x56xf32>
    %c1_141 = arith.constant 1 : index
    %c0_142 = arith.constant 0 : index
    %c0_143 = arith.constant 0 : index
    %129 = vector.load %arg4[%c1_141, %c0_142, %c0_143] : memref<3x56x80xf32, #tpu.memory_space<vmem>>, vector<1x56x80xf32>
    %130 = vector.shape_cast %129 : vector<1x56x80xf32> to vector<56x80xf32>
    %cst_144 = arith.constant dense<0.000000e+00> : vector<5x80xf32>
    %131 = tpu.matmul %128, %130, %cst_144 {dimension_numbers = #tpu.dot_dimension_numbers<[1], [0], [0], [1], [0, 0, 1, 1], [], []>} : vector<5x56xf32>, vector<56x80xf32>, vector<5x80xf32> -> vector<5x80xf32>
    %132 = arith.addf %127, %131 : vector<5x80xf32>
    %c2_145 = arith.constant 2 : index
    %c0_146 = arith.constant 0 : index
    %133 = vector.load %arg13[%c2_145, %c0_146] : memref<14x56xf32, #tpu.memory_space<vmem>>, vector<5x56xf32>
    %c2_147 = arith.constant 2 : index
    %c0_148 = arith.constant 0 : index
    %c0_149 = arith.constant 0 : index
    %134 = vector.load %arg4[%c2_147, %c0_148, %c0_149] : memref<3x56x80xf32, #tpu.memory_space<vmem>>, vector<1x56x80xf32>
    %135 = vector.shape_cast %134 : vector<1x56x80xf32> to vector<56x80xf32>
    %cst_150 = arith.constant dense<0.000000e+00> : vector<5x80xf32>
    %136 = tpu.matmul %133, %135, %cst_150 {dimension_numbers = #tpu.dot_dimension_numbers<[1], [0], [0], [1], [0, 0, 1, 1], [], []>} : vector<5x56xf32>, vector<56x80xf32>, vector<5x80xf32> -> vector<5x80xf32>
    %137 = arith.addf %132, %136 : vector<5x80xf32>
    %138 = vector.broadcast %123 : vector<1x80xf32> to vector<5x80xf32>
    %139 = arith.addf %137, %138 : vector<5x80xf32>
    %cst_151 = arith.constant 0.000000e+00 : f32
    %140 = vector.broadcast %cst_151 : f32 to vector<5x80xf32>
    %141 = arith.maximumf %139, %140 : vector<5x80xf32>
    %c0_152 = arith.constant 0 : index
    %c0_153 = arith.constant 0 : index
    %142 = vector.load %arg14[%c0_152, %c0_153] : memref<10x80xf32, #tpu.memory_space<vmem>>, vector<5x80xf32>
    tpu.vector_store %arg14[%c0_152, %c0_153], %141 {strides = array<i32>} : memref<10x80xf32, #tpu.memory_space<vmem>>, vector<5x80xf32>,
    %c7_154 = arith.constant 7 : index
    %c0_155 = arith.constant 0 : index
    %143 = vector.load %arg13[%c7_154, %c0_155] : memref<14x56xf32, #tpu.memory_space<vmem>>, vector<5x56xf32>
    %c0_156 = arith.constant 0 : index
    %c0_157 = arith.constant 0 : index
    %c0_158 = arith.constant 0 : index
    %144 = vector.load %arg4[%c0_156, %c0_157, %c0_158] : memref<3x56x80xf32, #tpu.memory_space<vmem>>, vector<1x56x80xf32>
    %145 = vector.shape_cast %144 : vector<1x56x80xf32> to vector<56x80xf32>
    %cst_159 = arith.constant dense<0.000000e+00> : vector<5x80xf32>
    %146 = tpu.matmul %143, %145, %cst_159 {dimension_numbers = #tpu.dot_dimension_numbers<[1], [0], [0], [1], [0, 0, 1, 1], [], []>} : vector<5x56xf32>, vector<56x80xf32>, vector<5x80xf32> -> vector<5x80xf32>
    %c8_160 = arith.constant 8 : index
    %c0_161 = arith.constant 0 : index
    %147 = vector.load %arg13[%c8_160, %c0_161] : memref<14x56xf32, #tpu.memory_space<vmem>>, vector<5x56xf32>
    %c1_162 = arith.constant 1 : index
    %c0_163 = arith.constant 0 : index
    %c0_164 = arith.constant 0 : index
    %148 = vector.load %arg4[%c1_162, %c0_163, %c0_164] : memref<3x56x80xf32, #tpu.memory_space<vmem>>, vector<1x56x80xf32>
    %149 = vector.shape_cast %148 : vector<1x56x80xf32> to vector<56x80xf32>
    %cst_165 = arith.constant dense<0.000000e+00> : vector<5x80xf32>
    %150 = tpu.matmul %147, %149, %cst_165 {dimension_numbers = #tpu.dot_dimension_numbers<[1], [0], [0], [1], [0, 0, 1, 1], [], []>} : vector<5x56xf32>, vector<56x80xf32>, vector<5x80xf32> -> vector<5x80xf32>
    %151 = arith.addf %146, %150 : vector<5x80xf32>
    %c9_166 = arith.constant 9 : index
    %c0_167 = arith.constant 0 : index
    %152 = vector.load %arg13[%c9_166, %c0_167] : memref<14x56xf32, #tpu.memory_space<vmem>>, vector<5x56xf32>
    %c2_168 = arith.constant 2 : index
    %c0_169 = arith.constant 0 : index
    %c0_170 = arith.constant 0 : index
    %153 = vector.load %arg4[%c2_168, %c0_169, %c0_170] : memref<3x56x80xf32, #tpu.memory_space<vmem>>, vector<1x56x80xf32>
    %154 = vector.shape_cast %153 : vector<1x56x80xf32> to vector<56x80xf32>
    %cst_171 = arith.constant dense<0.000000e+00> : vector<5x80xf32>
    %155 = tpu.matmul %152, %154, %cst_171 {dimension_numbers = #tpu.dot_dimension_numbers<[1], [0], [0], [1], [0, 0, 1, 1], [], []>} : vector<5x56xf32>, vector<56x80xf32>, vector<5x80xf32> -> vector<5x80xf32>
    %156 = arith.addf %151, %155 : vector<5x80xf32>
    %157 = vector.broadcast %123 : vector<1x80xf32> to vector<5x80xf32>
    %158 = arith.addf %156, %157 : vector<5x80xf32>
    %cst_172 = arith.constant 0.000000e+00 : f32
    %159 = vector.broadcast %cst_172 : f32 to vector<5x80xf32>
    %160 = arith.maximumf %158, %159 : vector<5x80xf32>
    %c5_173 = arith.constant 5 : index
    %c0_174 = arith.constant 0 : index
    %161 = vector.load %arg14[%c5_173, %c0_174] : memref<10x80xf32, #tpu.memory_space<vmem>>, vector<5x80xf32>
    tpu.vector_store %arg14[%c5_173, %c0_174], %160 {strides = array<i32>} : memref<10x80xf32, #tpu.memory_space<vmem>>, vector<5x80xf32>,
    %c0_175 = arith.constant 0 : index
    %c0_176 = arith.constant 0 : index
    %162 = vector.load %arg14[%c0_175, %c0_176] : memref<10x80xf32, #tpu.memory_space<vmem>>, vector<10x16xf32>
    %c0_177 = arith.constant 0 : index
    %c16_178 = arith.constant 16 : index
    %163 = vector.load %arg14[%c0_177, %c16_178] : memref<10x80xf32, #tpu.memory_space<vmem>>, vector<10x16xf32>
    %164 = arith.maximumf %162, %163 : vector<10x16xf32>
    %c0_179 = arith.constant 0 : index
    %c0_180 = arith.constant 0 : index
    %165 = vector.load %arg15[%c0_179, %c0_180] : memref<10x32xf32, #tpu.memory_space<vmem>>, vector<10x16xf32>
    tpu.vector_store %arg15[%c0_179, %c0_180], %164 {strides = array<i32>} : memref<10x32xf32, #tpu.memory_space<vmem>>, vector<10x16xf32>,
    %c0_181 = arith.constant 0 : index
    %c32_182 = arith.constant 32 : index
    %166 = vector.load %arg14[%c0_181, %c32_182] : memref<10x80xf32, #tpu.memory_space<vmem>>, vector<10x16xf32>
    %c0_183 = arith.constant 0 : index
    %c48_184 = arith.constant 48 : index
    %167 = vector.load %arg14[%c0_183, %c48_184] : memref<10x80xf32, #tpu.memory_space<vmem>>, vector<10x16xf32>
    %168 = arith.maximumf %166, %167 : vector<10x16xf32>
    %c0_185 = arith.constant 0 : index
    %c16_186 = arith.constant 16 : index
    %169 = vector.load %arg15[%c0_185, %c16_186] : memref<10x32xf32, #tpu.memory_space<vmem>>, vector<10x16xf32>
    tpu.vector_store %arg15[%c0_185, %c16_186], %168 {strides = array<i32>} : memref<10x32xf32, #tpu.memory_space<vmem>>, vector<10x16xf32>,
    %c0_187 = arith.constant 0 : index
    %c0_188 = arith.constant 0 : index
    %170 = vector.load %arg15[%c0_187, %c0_188] : memref<10x32xf32, #tpu.memory_space<vmem>>, vector<1x32xf32>
    %c1_189 = arith.constant 1 : index
    %c0_190 = arith.constant 0 : index
    %171 = vector.load %arg15[%c1_189, %c0_190] : memref<10x32xf32, #tpu.memory_space<vmem>>, vector<1x32xf32>
    %172 = arith.maximumf %170, %171 : vector<1x32xf32>
    %c0_191 = arith.constant 0 : index
    %c0_192 = arith.constant 0 : index
    %173 = vector.load %arg16[%c0_191, %c0_192] : memref<4x32xf32, #tpu.memory_space<vmem>>, vector<1x32xf32>
    tpu.vector_store %arg16[%c0_191, %c0_192], %172 {strides = array<i32>} : memref<4x32xf32, #tpu.memory_space<vmem>>, vector<1x32xf32>,
    %c2_193 = arith.constant 2 : index
    %c0_194 = arith.constant 0 : index
    %174 = vector.load %arg15[%c2_193, %c0_194] : memref<10x32xf32, #tpu.memory_space<vmem>>, vector<1x32xf32>
    %c3_195 = arith.constant 3 : index
    %c0_196 = arith.constant 0 : index
    %175 = vector.load %arg15[%c3_195, %c0_196] : memref<10x32xf32, #tpu.memory_space<vmem>>, vector<1x32xf32>
    %176 = arith.maximumf %174, %175 : vector<1x32xf32>
    %c1_197 = arith.constant 1 : index
    %c0_198 = arith.constant 0 : index
    %177 = vector.load %arg16[%c1_197, %c0_198] : memref<4x32xf32, #tpu.memory_space<vmem>>, vector<1x32xf32>
    tpu.vector_store %arg16[%c1_197, %c0_198], %176 {strides = array<i32>} : memref<4x32xf32, #tpu.memory_space<vmem>>, vector<1x32xf32>,
    %c5_199 = arith.constant 5 : index
    %c0_200 = arith.constant 0 : index
    %178 = vector.load %arg15[%c5_199, %c0_200] : memref<10x32xf32, #tpu.memory_space<vmem>>, vector<1x32xf32>
    %c6_201 = arith.constant 6 : index
    %c0_202 = arith.constant 0 : index
    %179 = vector.load %arg15[%c6_201, %c0_202] : memref<10x32xf32, #tpu.memory_space<vmem>>, vector<1x32xf32>
    %180 = arith.maximumf %178, %179 : vector<1x32xf32>
    %c2_203 = arith.constant 2 : index
    %c0_204 = arith.constant 0 : index
    %181 = vector.load %arg16[%c2_203, %c0_204] : memref<4x32xf32, #tpu.memory_space<vmem>>, vector<1x32xf32>
    tpu.vector_store %arg16[%c2_203, %c0_204], %180 {strides = array<i32>} : memref<4x32xf32, #tpu.memory_space<vmem>>, vector<1x32xf32>,
    %c7_205 = arith.constant 7 : index
    %c0_206 = arith.constant 0 : index
    %182 = vector.load %arg15[%c7_205, %c0_206] : memref<10x32xf32, #tpu.memory_space<vmem>>, vector<1x32xf32>
    %c8_207 = arith.constant 8 : index
    %c0_208 = arith.constant 0 : index
    %183 = vector.load %arg15[%c8_207, %c0_208] : memref<10x32xf32, #tpu.memory_space<vmem>>, vector<1x32xf32>
    %184 = arith.maximumf %182, %183 : vector<1x32xf32>
    %c3_209 = arith.constant 3 : index
    %c0_210 = arith.constant 0 : index
    %185 = vector.load %arg16[%c3_209, %c0_210] : memref<4x32xf32, #tpu.memory_space<vmem>>, vector<1x32xf32>
    tpu.vector_store %arg16[%c3_209, %c0_210], %184 {strides = array<i32>} : memref<4x32xf32, #tpu.memory_space<vmem>>, vector<1x32xf32>,
    %c0_211 = arith.constant 0 : index
    %c0_212 = arith.constant 0 : index
    %186 = vector.load %arg16[%c0_211, %c0_212] : memref<4x32xf32, #tpu.memory_space<vmem>>, vector<1x32xf32>
    %c0_213 = arith.constant 0 : index
    %c0_214 = arith.constant 0 : index
    %187 = vector.load %arg17[%c0_213, %c0_214] : memref<2x64xf32, #tpu.memory_space<vmem>>, vector<1x32xf32>
    tpu.vector_store %arg17[%c0_213, %c0_214], %186 {strides = array<i32>} : memref<2x64xf32, #tpu.memory_space<vmem>>, vector<1x32xf32>,
    %c1_215 = arith.constant 1 : index
    %c0_216 = arith.constant 0 : index
    %188 = vector.load %arg16[%c1_215, %c0_216] : memref<4x32xf32, #tpu.memory_space<vmem>>, vector<1x32xf32>
    %c0_217 = arith.constant 0 : index
    %c32_218 = arith.constant 32 : index
    %189 = vector.load %arg17[%c0_217, %c32_218] : memref<2x64xf32, #tpu.memory_space<vmem>>, vector<1x32xf32>
    tpu.vector_store %arg17[%c0_217, %c32_218], %188 {strides = array<i32>} : memref<2x64xf32, #tpu.memory_space<vmem>>, vector<1x32xf32>,
    %c2_219 = arith.constant 2 : index
    %c0_220 = arith.constant 0 : index
    %190 = vector.load %arg16[%c2_219, %c0_220] : memref<4x32xf32, #tpu.memory_space<vmem>>, vector<1x32xf32>
    %c1_221 = arith.constant 1 : index
    %c0_222 = arith.constant 0 : index
    %191 = vector.load %arg17[%c1_221, %c0_222] : memref<2x64xf32, #tpu.memory_space<vmem>>, vector<1x32xf32>
    tpu.vector_store %arg17[%c1_221, %c0_222], %190 {strides = array<i32>} : memref<2x64xf32, #tpu.memory_space<vmem>>, vector<1x32xf32>,
    %c3_223 = arith.constant 3 : index
    %c0_224 = arith.constant 0 : index
    %192 = vector.load %arg16[%c3_223, %c0_224] : memref<4x32xf32, #tpu.memory_space<vmem>>, vector<1x32xf32>
    %c1_225 = arith.constant 1 : index
    %c32_226 = arith.constant 32 : index
    %193 = vector.load %arg17[%c1_225, %c32_226] : memref<2x64xf32, #tpu.memory_space<vmem>>, vector<1x32xf32>
    tpu.vector_store %arg17[%c1_225, %c32_226], %192 {strides = array<i32>} : memref<2x64xf32, #tpu.memory_space<vmem>>, vector<1x32xf32>,
    %c0_227 = arith.constant 0 : index
    %c0_228 = arith.constant 0 : index
    %194 = vector.load %arg17[%c0_227, %c0_228] : memref<2x64xf32, #tpu.memory_space<vmem>>, vector<2x64xf32>
    %c0_229 = arith.constant 0 : index
    %c0_230 = arith.constant 0 : index
    %195 = vector.load %arg6[%c0_229, %c0_230] : memref<64x32xf32, #tpu.memory_space<vmem>>, vector<64x32xf32>
    %cst_231 = arith.constant dense<0.000000e+00> : vector<2x32xf32>
    %196 = tpu.matmul %194, %195, %cst_231 {dimension_numbers = #tpu.dot_dimension_numbers<[1], [0], [0], [1], [0, 0, 1, 1], [], []>} : vector<2x64xf32>, vector<64x32xf32>, vector<2x32xf32> -> vector<2x32xf32>
    %c0_232 = arith.constant 0 : index
    %c0_233 = arith.constant 0 : index
    %197 = vector.load %arg7[%c0_232, %c0_233] : memref<1x32xf32, #tpu.memory_space<vmem>>, vector<1x32xf32>
    %198 = vector.broadcast %197 : vector<1x32xf32> to vector<2x32xf32>
    %199 = arith.addf %196, %198 : vector<2x32xf32>
    %cst_234 = arith.constant 0.000000e+00 : f32
    %200 = vector.broadcast %cst_234 : f32 to vector<2x32xf32>
    %201 = arith.maximumf %199, %200 : vector<2x32xf32>
    %c0_235 = arith.constant 0 : index
    %c0_236 = arith.constant 0 : index
    %202 = vector.load %arg8[%c0_235, %c0_236] : memref<32x10xf32, #tpu.memory_space<vmem>>, vector<32x10xf32>
    %cst_237 = arith.constant dense<0.000000e+00> : vector<2x10xf32>
    %203 = tpu.matmul %201, %202, %cst_237 {dimension_numbers = #tpu.dot_dimension_numbers<[1], [0], [0], [1], [0, 0, 1, 1], [], []>} : vector<2x32xf32>, vector<32x10xf32>, vector<2x10xf32> -> vector<2x10xf32>
    %c0_238 = arith.constant 0 : index
    %c0_239 = arith.constant 0 : index
    %204 = vector.load %arg9[%c0_238, %c0_239] : memref<1x10xf32, #tpu.memory_space<vmem>>, vector<1x10xf32>
    %205 = vector.broadcast %204 : vector<1x10xf32> to vector<2x10xf32>
    %206 = arith.addf %203, %205 : vector<2x10xf32>
    %cst_240 = arith.constant 0.000000e+00 : f32
    %207 = vector.broadcast %cst_240 : f32 to vector<2x10xf32>
    %208 = arith.maximumf %206, %207 : vector<2x10xf32>
    %c0_241 = arith.constant 0 : index
    %c0_242 = arith.constant 0 : index
    %209 = vector.load %arg10[%c0_241, %c0_242] : memref<2x10xf32, #tpu.memory_space<vmem>>, vector<2x10xf32>
    tpu.vector_store %arg10[%c0_241, %c0_242], %208 {strides = array<i32>} : memref<2x10xf32, #tpu.memory_space<vmem>>, vector<2x10xf32>,
    return
  }
  func.func @transform_0(%arg0: i32) -> (i32, i32) {
    %c0_i32 = arith.constant 0 : i32
    %c0_i32_0 = arith.constant 0 : i32
    %c0_i32_1 = arith.constant 0 : i32
    return %c0_i32, %c0_i32_0 : i32, i32
  }
  func.func @transform_1(%arg0: i32) -> (i32, i32, i32) {
    %c0_i32 = arith.constant 0 : i32
    %c0_i32_0 = arith.constant 0 : i32
    %c0_i32_1 = arith.constant 0 : i32
    %c0_i32_2 = arith.constant 0 : i32
    return %c0_i32, %c0_i32_0, %c0_i32_1 : i32, i32, i32
  }
  func.func @transform_2(%arg0: i32) -> (i32, i32) {
    %c0_i32 = arith.constant 0 : i32
    %c0_i32_0 = arith.constant 0 : i32
    %c0_i32_1 = arith.constant 0 : i32
    return %c0_i32, %c0_i32_0 : i32, i32
  }
  func.func @transform_3(%arg0: i32) -> (i32, i32, i32) {
    %c0_i32 = arith.constant 0 : i32
    %c0_i32_0 = arith.constant 0 : i32
    %c0_i32_1 = arith.constant 0 : i32
    %c0_i32_2 = arith.constant 0 : i32
    return %c0_i32, %c0_i32_0, %c0_i32_1 : i32, i32, i32
  }
  func.func @transform_4(%arg0: i32) -> (i32, i32) {
    %c0_i32 = arith.constant 0 : i32
    %c0_i32_0 = arith.constant 0 : i32
    %c0_i32_1 = arith.constant 0 : i32
    return %c0_i32, %c0_i32_0 : i32, i32
  }
  func.func @transform_5(%arg0: i32) -> (i32, i32) {
    %c0_i32 = arith.constant 0 : i32
    %c0_i32_0 = arith.constant 0 : i32
    %c0_i32_1 = arith.constant 0 : i32
    return %c0_i32, %c0_i32_0 : i32, i32
  }
  func.func @transform_6(%arg0: i32) -> (i32, i32) {
    %c0_i32 = arith.constant 0 : i32
    %c0_i32_0 = arith.constant 0 : i32
    %c0_i32_1 = arith.constant 0 : i32
    return %c0_i32, %c0_i32_0 : i32, i32
  }
  func.func @transform_7(%arg0: i32) -> (i32, i32) {
    %c0_i32 = arith.constant 0 : i32
    %c0_i32_0 = arith.constant 0 : i32
    %c0_i32_1 = arith.constant 0 : i32
    return %c0_i32, %c0_i32_0 : i32, i32
  }
  func.func @transform_8(%arg0: i32) -> (i32, i32) {
    %c0_i32 = arith.constant 0 : i32
    %c0_i32_0 = arith.constant 0 : i32
    %c0_i32_1 = arith.constant 0 : i32
    return %c0_i32, %c0_i32_0 : i32, i32
  }
  func.func @transform_9(%arg0: i32) -> (i32, i32) {
    %c0_i32 = arith.constant 0 : i32
    %c0_i32_0 = arith.constant 0 : i32
    %c0_i32_1 = arith.constant 0 : i32
    return %c0_i32, %c0_i32_0 : i32, i32
  }
}

</mosaic_0001>

<bundles_post_ra>
// kernel: _lambda_.1
= control target key start
LH: loop header
LB: loop body
LE: loop exit
PB: predicated region body
PF: predicated region fallthrough
CT: control target
= control target key end

     0   :  { %s2897_s0 = inlined_call_operand.vmem [shape: f32[32,64], index: 0, kind: input, shape index: {}]   ;;  %s2898_s1 = inlined_call_operand.vmem [shape: f32[3,64,112], index: 1, kind: input, shape index: {}]   ;;  %s2899_s2 = inlined_call_operand.vmem [shape: f32[1,112], index: 2, kind: input, shape index: {}]   ;;  %s2900_s3 = inlined_call_operand.vmem [shape: f32[3,56,80], index: 3, kind: input, shape index: {}]   ;;  %s2901_s4 = inlined_call_operand.vmem [shape: f32[1,80], index: 4, kind: input, shape index: {}]   ;;  %s2902_s5 = inlined_call_operand.vmem [shape: f32[64,32], index: 5, kind: input, shape index: {}]   ;;  %s2903_s6 = inlined_call_operand.vmem [shape: f32[1,32], index: 6, kind: input, shape index: {}]   ;;  %s2904_s7 = inlined_call_operand.vmem [shape: f32[32,10], index: 7, kind: input, shape index: {}]   ;;  %s2905_s8 = inlined_call_operand.vmem [shape: f32[1,10], index: 8, kind: input, shape index: {}]   ;;  %s2906_s9 = inlined_call_operand.hbm [shape: f32[2,10], index: 9, kind: output, shape index: {}]  }
   0x1   :  { %v1748_v0 = vld [vmem:[%s2898_s1 + $0x78] sm:$0xff]  ;;  %v2296_v2 = vld [vmem:[%s2898_s1 + $0x70] sm:$0xff]  ;;  %v2308_v4 = vld [vmem:[%s2898_s1 + $0x68] sm:$0xff] }
   0x2   :  { %v2291_v1 = vld [vmem:[%s2898_s1 + $0x38] sm:$0xff]  ;;  %1947 = vmatprep.subr.mxu0 %v1748_v0  ;;  %v2302_v3 = vld [vmem:[%s2898_s1 + $0x30] sm:$0xff]  ;;  %v2313_v5 = vld [vmem:[%s2898_s1 + $0x28] sm:$0xff] }
   0x3   :  { %1966 = vmatprep.subr.mxu1 %v2291_v1  ;;  %1948 = vmatpush3.msra.mxu0 %v1748_v0  ;;  %v2322_v6 = vld [vmem:[%s2898_s1 + $0x60] sm:$0xff]  ;;  %v1744_v8 = vld [vmem:[%s2898_s1 + $0x58] sm:$0xff]  ;;  %v1743_v10 = vld [vmem:[%s2898_s1 + $0x50] sm:$0xff] }
   0x4   :  { %1967 = vmatpush3.msra.mxu1 %v2291_v1  ;;  %1949 = vmatprep.subr.mxu0 %v2296_v2  ;;  %v2327_v7 = vld [vmem:[%s2898_s1 + $0x20] sm:$0xff]  ;;  %v2339_v9 = vld [vmem:[%s2898_s1 + $0x18] sm:$0xff]  ;;  %v2351_v11 = vld [vmem:[%s2898_s1 + $0x10] sm:$0xff] }
   0x5   :  { %1968 = vmatprep.subr.mxu1 %v2302_v3  ;;  %1950 = vmatpush3.msra.mxu0 %v2296_v2  ;;  %v1742_v12 = vld [vmem:[%s2898_s1 + $0x48] sm:$0xff]  ;;  %v2368_v14 = vld [vmem:[%s2898_s1 + $0x40] sm:$0xff] }
   0x6   :  { %1969 = vmatpush3.msra.mxu1 %v2302_v3  ;;  %1951 = vmatprep.subr.mxu0 %v2308_v4  ;;  %v2361_v13 = vld [vmem:[%s2898_s1 + $0x8] sm:$0xff]  ;;  %v2373_v15 = vld [vmem:[%s2898_s1] sm:$0xff] }
   0x7   :  { %1970 = vmatprep.subr.mxu1 %v2313_v5  ;;  %1952 = vmatpush3.msra.mxu0 %v2308_v4 }
   0x8   :  { %1971 = vmatpush3.msra.mxu1 %v2313_v5  ;;  %1953 = vmatprep.subr.mxu0 %v2322_v6 }
   0x9   :  { %1972 = vmatprep.subr.mxu1 %v2327_v7  ;;  %1954 = vmatpush3.msra.mxu0 %v2322_v6 }
   0xa   :  { %1973 = vmatpush3.msra.mxu1 %v2327_v7  ;;  %1955 = vmatprep.subr.mxu0 %v1744_v8 }
   0xb   :  { %1974 = vmatprep.subr.mxu1 %v2339_v9  ;;  %1956 = vmatpush3.msra.mxu0 %v1744_v8 }
   0xc   :  { %1975 = vmatpush3.msra.mxu1 %v2339_v9  ;;  %1957 = vmatprep.subr.mxu0 %v1743_v10 }
   0xd   :  { %1976 = vmatprep.subr.mxu1 %v2351_v11  ;;  %1958 = vmatpush3.msra.mxu0 %v1743_v10 }
   0xe   :  { %1977 = vmatpush3.msra.mxu1 %v2351_v11 }
   0xf   :  { %14 = vsyncpa [#allocation10], 0  ;;  %1959 = vmatprep.subr.mxu0 %v1742_v12  ;;  %1978 = vmatprep.subr.mxu1 %v2361_v13  ;;  %v44_v16 = vld [vmem:[%s2897_s0 + $0x1] sm:$0xff]  ;;  %vm55_vm0 = vcmask 523264   ;;  %v45_v18 = vld [vmem:[%s2897_s0 + $0x9] sm:$0x3f] }
  0x10   :  { %1960 = vmatpush3.msra.mxu0 %v1742_v12  ;;  %1979 = vmatpush3.msra.mxu1 %v2361_v13  ;;  %v34_v17 = vld [vmem:[%s2897_s0] sm:$0xff]  ;;  %v35_v19 = vld [vmem:[%s2897_s0 + $0x8] sm:$0x3f]  ;;  %v1760_v20 = vld [vmem:[%s2898_s1 + $0xb8] sm:$0xff]  ;;  %vm324_vm1 = vcmask 914432   ;;  %vm322_vm2 = vcmask 916480  }
  0x11   :  { %1961 = vmatprep.subr.mxu0 %v2368_v14  ;;  %1980 = vmatprep.subr.mxu1 %v2373_v15  ;;  %v1759_v21 = vld [vmem:[%s2898_s1 + $0xb0] sm:$0xff]  ;;  %v1758_v22 = vld [vmem:[%s2898_s1 + $0xa8] sm:$0xff]  ;;  %v1757_v23 = vld [vmem:[%s2898_s1 + $0xa0] sm:$0xff]  ;;  %s2227_s19 = smov 104   ;;  %s2228_s20 = smov 96   ;;  %vm631_vm3 = vcmask 64512  }
  0x12   :  { %1962 = vmatpush3.msra.mxu0 %v2368_v14  ;;  %1963 = vmatprep.mubr.msk.f32.mxu0 %vm55_vm0, %v44_v16  ;;  %v1756_v24 = vld [vmem:[%s2898_s1 + $0x98] sm:$0xff]  ;;  %v1755_v25 = vld [vmem:[%s2898_s1 + $0x90] sm:$0xff]  ;;  %v1754_v26 = vld [vmem:[%s2898_s1 + $0x88] sm:$0xff]  ;;  %s2229_s21 = smov 88   ;;  %s2230_s22 = smov 80   ;;  %vm2232_vm4 = vmmov 0  }
  0x13   :  { %1981 = vmatpush3.msra.mxu1 %v2373_v15  ;;  %1982 = vmatprep.mubr.msk.f32.mxu1 %vm55_vm0, %v34_v17  ;;  %v1753_v27 = vld [vmem:[%s2898_s1 + $0x80] sm:$0xff]  ;;  %v219_v29 = vld [vmem:[%s2897_s0 + $0xa] sm:$0x3f]  ;;  %v336_v30 = vld [vmem:[%s2897_s0 + $0x11] sm:$0xff]  ;;  %vm635_vm5 = vcmask 60416   ;;  %vm677_vm6 = vcmask 130112  }
  0x14   :  { %1964 = vmatmul.mubr.msk.f32.vlgmr.msra.gmra.mxu0 %vm55_vm0, %v45_v18  ;;  %1983 = vmatmul.mubr.msk.f32.vlgmr.msra.gmra.mxu1 %vm55_vm0, %v35_v19  ;;  %v218_v28 = vld [vmem:[%s2897_s0 + $0x2] sm:$0xff]  ;;  %v337_v31 = vld [vmem:[%s2897_s0 + $0x19] sm:$0x3f]  ;;  %v326_v32 = vld [vmem:[%s2897_s0 + $0x10] sm:$0xff]  ;;  %vm723_vm7 = vcmask 195712   ;;  %vm769_vm8 = vcmask 261312  }
  0x15   :  { %1985 = vmatprep.subr.mxu0 %v1760_v20  ;;  %2004 = vmatprep.subr.mxu1 %v1748_v0  ;;  %v508_v33 = vld [vmem:[%s2897_s0 + $0x12] sm:$0xff]  ;;  %v509_v35 = vld [vmem:[%s2897_s0 + $0x1a] sm:$0x3f]  ;;  %v1763_v41 = vld [vmem:[%s2899_s2] ss:$0 sm:$0xff]  ;;  %s2226_s2 = smov 112  }
  0x16   :  { %1986 = vmatpush3.msra.mxu0 %v1760_v20  ;;  %2005 = vmatpush3.msra.mxu1 %v1748_v0  ;;  %v327_v34 = vld [vmem:[%s2897_s0 + $0x18] sm:$0x3f]  ;;  %s2225_s0 = smov 120   ;;  %vm815_vm9 = vcmask 326912   ;;  %vm861_vm10 = vcmask 392512   ;;  %vm681_vm11 = vcmask 126016  }
  0x17   :  { %1987 = vmatprep.subr.mxu0 %v1759_v21  ;;  %2006 = vmatprep.subr.mxu1 %v2296_v2  ;;  %vm907_vm12 = vcmask 458112   ;;  %vm727_vm13 = vcmask 191616   ;;  %vm916_vm14 = vcmask 450560   ;;  %vm773_vm15 = vcmask 257216   ;;  %s2233_s14 = smov 32   ;;  %s2234_s25 = smov [#allocation9]  }
  0x18   :  { %1988 = vmatpush3.msra.mxu0 %v1759_v21  ;;  %2007 = vmatpush3.msra.mxu1 %v2296_v2  ;;  %s1733_s26 = sshll.u32 %s2234_s25, 4  ;;  %s1734_s26 = int_to_ptr.vmem [resolvable:$true] %s1733_s26 }
  0x19   :  { %1989 = vmatprep.subr.mxu0 %v1758_v22  ;;  %2008 = vmatprep.subr.mxu1 %v2308_v4  ;;  %p2208_p1 = scmp.lt.s32.totalorder %s1734_s26, %s1734_s26 }
  0x1a   :  { %1990 = vmatpush3.msra.mxu0 %v1758_v22  ;;  %2009 = vmatpush3.msra.mxu1 %v2308_v4 }
  0x1b   :  { %1991 = vmatprep.subr.mxu0 %v1757_v23  ;;  %2010 = vmatprep.subr.mxu1 %v2322_v6 }
  0x1c   :  { %1992 = vmatpush3.msra.mxu0 %v1757_v23  ;;  %2011 = vmatpush3.msra.mxu1 %v2322_v6 }
  0x1d   :  { %1993 = vmatprep.subr.mxu0 %v1756_v24  ;;  %2012 = vmatprep.subr.mxu1 %v1744_v8 }
  0x1e   :  { %1994 = vmatpush3.msra.mxu0 %v1756_v24  ;;  %2013 = vmatpush3.msra.mxu1 %v1744_v8 }
  0x1f   :  { %1995 = vmatprep.subr.mxu0 %v1755_v25  ;;  %2014 = vmatprep.subr.mxu1 %v1743_v10 }
  0x20   :  { %1996 = vmatpush3.msra.mxu0 %v1755_v25  ;;  %2015 = vmatpush3.msra.mxu1 %v1743_v10 }
  0x21   :  { %1997 = vmatprep.subr.mxu0 %v1754_v26  ;;  %2016 = vmatprep.subr.mxu1 %v1742_v12 }
  0x22   :  { %1998 = vmatpush3.msra.mxu0 %v1754_v26  ;;  %2017 = vmatpush3.msra.mxu1 %v1742_v12 }
  0x23   :  { %1999 = vmatprep.subr.mxu0 %v1753_v27  ;;  %2018 = vmatprep.subr.mxu1 %v2368_v14 }
  0x24   :  { %2000 = vmatpush3.msra.mxu0 %v1753_v27  ;;  %2001 = vmatprep.mubr.msk.f32.mxu0 %vm55_vm0, %v218_v28 }
  0x25   :  { %2019 = vmatpush3.msra.mxu1 %v2368_v14  ;;  %2002 = vmatmul.mubr.msk.f32.vlgmr.msra.gmra.mxu0 %vm55_vm0, %v219_v29 }
  0x26   :  { %2020 = vmatprep.mubr.msk.f32.mxu1 %vm55_vm0, %v336_v30  ;;  %2023 = vmatprep.subr.mxu0 %v2291_v1 }
  0x27   :  { %2042 = vmatprep.subr.mxu1 %v1760_v20  ;;  %2021 = vmatmul.mubr.msk.f32.vlgmr.msra.gmra.mxu1 %vm55_vm0, %v337_v31 }
  0x28   :  { %2024 = vmatpush3.msra.mxu0 %v2291_v1  ;;  %2043 = vmatpush3.msra.mxu1 %v1760_v20 }
  0x29   :  { %2025 = vmatprep.subr.mxu0 %v2302_v3  ;;  %2044 = vmatprep.subr.mxu1 %v1759_v21 }
  0x2a   :  { %2026 = vmatpush3.msra.mxu0 %v2302_v3  ;;  %2045 = vmatpush3.msra.mxu1 %v1759_v21 }
  0x2b   :  { %2027 = vmatprep.subr.mxu0 %v2313_v5  ;;  %2046 = vmatprep.subr.mxu1 %v1758_v22 }
  0x2c   :  { %2028 = vmatpush3.msra.mxu0 %v2313_v5  ;;  %2047 = vmatpush3.msra.mxu1 %v1758_v22 }
  0x2d   :  { %2029 = vmatprep.subr.mxu0 %v2327_v7  ;;  %2048 = vmatprep.subr.mxu1 %v1757_v23 }
  0x2e   :  { %2030 = vmatpush3.msra.mxu0 %v2327_v7  ;;  %2049 = vmatpush3.msra.mxu1 %v1757_v23 }
  0x2f   :  { %2031 = vmatprep.subr.mxu0 %v2339_v9  ;;  %2050 = vmatprep.subr.mxu1 %v1756_v24 }
  0x30   :  { %2032 = vmatpush3.msra.mxu0 %v2339_v9  ;;  %2051 = vmatpush3.msra.mxu1 %v1756_v24 }
  0x31   :  { %2033 = vmatprep.subr.mxu0 %v2351_v11  ;;  %2052 = vmatprep.subr.mxu1 %v1755_v25 }
  0x32   :  { %2034 = vmatpush3.msra.mxu0 %v2351_v11  ;;  %2053 = vmatpush3.msra.mxu1 %v1755_v25 }
  0x33   :  { %2035 = vmatprep.subr.mxu0 %v2361_v13  ;;  %2054 = vmatprep.subr.mxu1 %v1754_v26 }
  0x34   :  { %2036 = vmatpush3.msra.mxu0 %v2361_v13  ;;  %2055 = vmatpush3.msra.mxu1 %v1754_v26 }
  0x35   :  { %2037 = vmatprep.subr.mxu0 %v2373_v15  ;;  %2056 = vmatprep.subr.mxu1 %v1753_v27 }
  0x36   :  { %2038 = vmatpush3.msra.mxu0 %v2373_v15  ;;  %2039 = vmatprep.mubr.msk.f32.mxu0 %vm55_vm0, %v326_v32 }
  0x37   :  { %2057 = vmatpush3.msra.mxu1 %v1753_v27  ;;  %2058 = vmatprep.mubr.msk.f32.mxu1 %vm55_vm0, %v508_v33 }
  0x38   :  { %2040 = vmatmul.mubr.msk.f32.vlgmr.msra.gmra.mxu0 %vm55_vm0, %v327_v34  ;;  %2059 = vmatmul.mubr.msk.f32.vlgmr.msra.gmra.mxu1 %vm55_vm0, %v509_v35 }
  0xd4   :  { %v1965_v36 = vpop.f32.mrf.mxu0  ;;  %v1984_v37 = vpop.f32.mrf.mxu1 }
  0xd5   :  { %v215_v40 = vadd.f32 %v1984_v37, %v1965_v36 }
  0xd6   :  { %v128_v38 = vpop.f32.mrf.mxu0  ;;  %v209_v39 = vpop.f32.mrf.mxu1 }
  0xd7   :  { %v210_v43 = vadd.f32 %v209_v39, %v128_v38 }
  0xe5   :  { %v2003_v42 = vpop.f32.mrf.mxu0 }
  0xe6   :  { %v311_v44 = vadd.f32 %v2003_v42, %v215_v40 }
  0xe7   :  { %v301_v45 = vpop.f32.mrf.mxu0  ;;  %v2022_v51 = vpop.f32.mrf.mxu1 }
  0xe8   :  { %v319_v46 = vadd.f32 %v1763_v41, %v311_v44  ;;  %v310_v47 = vadd.f32 %v301_v45, %v210_v43 }
  0xe9   :  { %v418_v53 = vpop.f32.mrf.mxu1 }
  0xea   :  { %v321_v48 = vmax.f32 %v319_v46, 0.0  ;;  %v318_v49 = vadd.f32 %v1763_v41, %v310_v47  ;;  %v2231_v47 = vmov 0.0  }
  0xeb   :  { %2061 = vmatprep.subr.mxu0 %v2231_v47  ;;  %2078 = vmatprep.subr.mxu1 %v2231_v47 }
  0xec   :  { %325 = vst.msk [vmem:[#allocation2 + $0x8] sm:$0x3f] %vm324_vm1, %v321_v48  ;;  %v320_v50 = vmax.f32 %v318_v49, 0.0  ;;  %v2589_v48 = vld [vmem:[%s2900_s3 + $0x68] sm:$0xff]  ;;  %2075 = vmatprep.mubr.msk.f32.mxu0 %vm2232_vm4, %v2231_v47  ;;  %2092 = vmatprep.mubr.msk.f32.mxu1 %vm2232_vm4, %v2231_v47 }
  0xed   :  { %2062 = vmatpush3.msra.mxu0 %v2589_v48 }
  0xee   :  { %323 = vst.msk [vmem:[#allocation2] sm:$0xff] %vm322_vm2, %v320_v50  ;;  %v2598_v50 = vld [vmem:[%s2900_s3 + $0x30] sm:$0xff]  ;;  %2063 = vmatprep.subr.mxu0 %v2231_v47 }
  0xef   :  { %2079 = vmatpush3.msra.mxu1 %v2598_v50 }
  0xf0   :  { %2080 = vmatprep.subr.mxu1 %v2231_v47 }
  0xf5   :  { %v2482_v52 = vld [vmem:[#allocation2] sm:$0xff] }
  0xf6   :  { %691 = vrot.lane.b32.xlu1 %v2482_v52, %s2225_s0  ;;  %645 = vrot.lane.b32.xlu0 %v2482_v52, %s2225_s0 }
  0xf8   :  { %v2041_v54 = vpop.f32.mrf.mxu0  ;;  %v2060_v55 = vpop.f32.mrf.mxu1 }
  0xf9   :  { %v505_v56 = vadd.f32 %v2041_v54, %v2022_v51 }
  0xfa   :  { %v499_v57 = vpop.f32.mrf.mxu0  ;;  %737 = vrot.lane.b32.xlu0 %v2482_v52, %s2225_s0  ;;  %v590_v60 = vpop.f32.mrf.mxu1 }
  0xfb   :  { %v600_v58 = vadd.f32 %v2060_v55, %v505_v56  ;;  %v500_v59 = vadd.f32 %v499_v57, %v418_v53  ;;  %v2605_v53 = vld [vmem:[%s2900_s3 + $0x60] sm:$0xff]  ;;  %v2613_v55 = vld [vmem:[%s2900_s3 + $0x28] sm:$0xff]  ;;  %v2620_v57 = vld [vmem:[%s2900_s3 + $0x58] sm:$0xff] }
  0xfc   :  { %2064 = vmatpush3.msra.mxu0 %v2605_v53  ;;  %2081 = vmatpush3.msra.mxu1 %v2613_v55 }
  0xfd   :  { %v602_v61 = vadd.f32 %v1763_v41, %v600_v58  ;;  %v599_v62 = vadd.f32 %v590_v60, %v500_v59  ;;  %2065 = vmatprep.subr.mxu0 %v2231_v47  ;;  %v2628_v59 = vld [vmem:[%s2900_s3 + $0x20] sm:$0xff]  ;;  %2082 = vmatprep.subr.mxu1 %v2231_v47 }
  0xfe   :  { %783 = vrot.lane.b32.xlu0 %v2482_v52, %s2225_s0  ;;  %2066 = vmatpush3.msra.mxu0 %v2620_v57 }
  0xff   :  { %v604_v63 = vmax.f32 %v602_v61, 0.0  ;;  %v601_v0 = vadd.f32 %v1763_v41, %v599_v62  ;;  %v2635_v61 = vld [vmem:[%s2900_s3 + $0x50] sm:$0xff]  ;;  %2067 = vmatprep.subr.mxu0 %v2231_v47  ;;  %2083 = vmatpush3.msra.mxu1 %v2628_v59 }
 0x100   :  { %2068 = vmatpush3.msra.mxu0 %v2635_v61  ;;  %2084 = vmatprep.subr.mxu1 %v2231_v47 }
 0x101   :  { %606 = vst.msk [vmem:[#allocation2 + $0x16] sm:$0x3f] %vm324_vm1, %v604_v63  ;;  %v603_v1 = vmax.f32 %v601_v0, 0.0  ;;  %v2643_v63 = vld [vmem:[%s2900_s3 + $0x18] sm:$0xff]  ;;  %v2648_v0 = vld [vmem:[%s2900_s3 + $0x48] sm:$0xff]  ;;  %2069 = vmatprep.subr.mxu0 %v2231_v47  ;;  %vm819_vm1 = vcmask 322816  }
 0x102   :  { %829 = vrot.lane.b32.xlu0 %v2482_v52, %s2225_s0  ;;  %2085 = vmatpush3.msra.mxu1 %v2643_v63 }
 0x103   :  { %605 = vst.msk [vmem:[#allocation2 + $0xe] sm:$0xff] %vm322_vm2, %v603_v1  ;;  %2070 = vmatpush3.msra.mxu0 %v2648_v0  ;;  %2086 = vmatprep.subr.mxu1 %v2231_v47  ;;  %vm865_vm2 = vcmask 388416  }
 0x104   :  { %2071 = vmatprep.subr.mxu0 %v2231_v47 }
 0x106   :  { %875 = vrot.lane.b32.xlu0 %v2482_v52, %s2225_s0 }
 0x108   :  { %v640_v2 = vld [vmem:[#allocation2 + $0x18] sm:$0xf] }
 0x109   :  { %651 = vrot.lane.b32.xlu1 %v640_v2, %s2225_s0  ;;  %v686_v4 = vld [vmem:[#allocation2 + $0x18] sm:$0xf] }
 0x10a   :  { %v2499_v3 = vld [vmem:[#allocation2 + $0x8] sm:$0xff]  ;;  %v2504_v5 = vld [vmem:[#allocation2 + $0x10] sm:$0xff]  ;;  %v2528_v6 = vld [vmem:[#allocation2 + $0x18] sm:$0xf] }
 0x10b   :  { %647 = vrot.lane.b32.xlu0 %v2499_v3, %s2225_s0  ;;  %v2534_v7 = vld [vmem:[#allocation2 + $0x18] sm:$0xf] }
 0x10c   :  { %v2540_v8 = vld [vmem:[#allocation2 + $0x18] sm:$0xf] }
 0x10d   :  { %697 = vrot.lane.b32.xlu1 %v686_v4, %s2225_s0  ;;  %v2544_v9 = vld [vmem:[#allocation2 + $0x18] sm:$0xf] }
 0x10e   :  { %v2548_v10 = vld [vmem:[#allocation2 + $0x18] sm:$0xf] }
 0x10f   :  { %649 = vrot.lane.b32.xlu0 %v2504_v5, %s2225_s0 }
 0x111   :  { %693 = vrot.lane.b32.xlu1 %v2499_v3, %s2225_s0 }
 0x113   :  { %695 = vrot.lane.b32.xlu0 %v2504_v5, %s2225_s0 }
 0x115   :  { %739 = vrot.lane.b32.xlu1 %v2499_v3, %s2225_s0 }
 0x117   :  { %741 = vrot.lane.b32.xlu0 %v2504_v5, %s2225_s0 }
 0x119   :  { %785 = vrot.lane.b32.xlu1 %v2499_v3, %s2225_s0 }
 0x11b   :  { %787 = vrot.lane.b32.xlu0 %v2504_v5, %s2225_s0 }
 0x11d   :  { %831 = vrot.lane.b32.xlu1 %v2499_v3, %s2225_s0 }
 0x11f   :  { %833 = vrot.lane.b32.xlu0 %v2504_v5, %s2225_s0 }
 0x121   :  { %877 = vrot.lane.b32.xlu1 %v2499_v3, %s2225_s0 }
 0x123   :  { %879 = vrot.lane.b32.xlu0 %v2504_v5, %s2225_s0 }
 0x125   :  { %743 = vrot.lane.b32.xlu1 %v2528_v6, %s2225_s0 }
 0x127   :  { %615 = vrot.lane.b32.xlu0 %v2482_v52, %s2225_s0 }
 0x129   :  { %789 = vrot.lane.b32.xlu1 %v2534_v7, %s2225_s0 }
 0x12b   :  { %619 = vrot.lane.b32.xlu0 %v2504_v5, %s2225_s0 }
 0x12d   :  { %835 = vrot.lane.b32.xlu1 %v2540_v8, %s2225_s0 }
 0x131   :  { %881 = vrot.lane.b32.xlu1 %v2544_v9, %s2225_s0 }
 0x135   :  { %621 = vrot.lane.b32.xlu1 %v2548_v10, %s2225_s0 }
 0x139   :  { %617 = vrot.lane.b32.xlu1 %v2499_v3, %s2225_s0 }
 0x168   :  { %v646_v11 = vpop.permute.xlu0 %645  ;;  %v692_v13 = vpop.permute.xlu1 %691 }
 0x169   :  { %v657_v12 = vmax.f32 %v2482_v52, %v646_v11  ;;  %v703_v15 = vmax.f32 %v2482_v52, %v692_v13 }
 0x16b   :  { %665 = vrot.lane.b32.xlu0 %v657_v12, %s2225_s0  ;;  %v2674_v12 = vld [vmem:[%s2900_s3 + $0x8] sm:$0xff] }
 0x16c   :  { %v738_v14 = vpop.permute.xlu0 %737 }
 0x16d   :  { %v749_v17 = vmax.f32 %v2482_v52, %v738_v14  ;;  %v2681_v14 = vld [vmem:[%s2900_s3 + $0x38] sm:$0xff] }
 0x16f   :  { %711 = vrot.lane.b32.xlu0 %v703_v15, %s2226_s2 }
 0x170   :  { %v784_v16 = vpop.permute.xlu0 %783 }
 0x171   :  { %v795_v19 = vmax.f32 %v2482_v52, %v784_v16 }
 0x173   :  { %757 = vrot.lane.b32.xlu0 %v749_v17, %s2227_s19 }
 0x174   :  { %v830_v18 = vpop.permute.xlu0 %829 }
 0x175   :  { %v841_v21 = vmax.f32 %v2482_v52, %v830_v18 }
 0x177   :  { %803 = vrot.lane.b32.xlu0 %v795_v19, %s2228_s20 }
 0x178   :  { %v876_v20 = vpop.permute.xlu0 %875 }
 0x179   :  { %v887_v24 = vmax.f32 %v2482_v52, %v876_v20 }
 0x17b   :  { %v652_v22 = vpop.permute.xlu1 %651  ;;  %849 = vrot.lane.b32.xlu0 %v841_v21, %s2229_s21 }
 0x17c   :  { %v660_v23 = vmax.f32 %v640_v2, %v652_v22 }
 0x17d   :  { %v648_v25 = vpop.permute.xlu0 %647 }
 0x17e   :  { %671 = vrot.lane.b32.xlu1 %v660_v23, %s2225_s0  ;;  %v658_v31 = vmax.f32 %v2499_v3, %v648_v25 }
 0x17f   :  { %v698_v26 = vpop.permute.xlu1 %697  ;;  %895 = vrot.lane.b32.xlu0 %v887_v24, %s2230_s22 }
 0x180   :  { %v706_v27 = vmax.f32 %v686_v4, %v698_v26 }
 0x181   :  { %v650_v28 = vpop.permute.xlu0 %649 }
 0x182   :  { %717 = vrot.lane.b32.xlu1 %v706_v27, %s2226_s2  ;;  %v659_v29 = vmax.f32 %v2504_v5, %v650_v28 }
 0x183   :  { %v694_v30 = vpop.permute.xlu1 %693 }
 0x184   :  { %669 = vrot.lane.b32.xlu0 %v659_v29, %s2225_s0  ;;  %v704_v35 = vmax.f32 %v2499_v3, %v694_v30 }
 0x185   :  { %v696_v32 = vpop.permute.xlu0 %695 }
 0x186   :  { %667 = vrot.lane.b32.xlu1 %v658_v31, %s2225_s0  ;;  %v705_v33 = vmax.f32 %v2504_v5, %v696_v32 }
 0x187   :  { %v740_v34 = vpop.permute.xlu1 %739 }
 0x188   :  { %715 = vrot.lane.b32.xlu0 %v705_v33, %s2226_s2  ;;  %v750_v39 = vmax.f32 %v2499_v3, %v740_v34 }
 0x189   :  { %v742_v36 = vpop.permute.xlu0 %741 }
 0x18a   :  { %713 = vrot.lane.b32.xlu1 %v704_v35, %s2226_s2  ;;  %v751_v37 = vmax.f32 %v2504_v5, %v742_v36 }
 0x18b   :  { %v786_v38 = vpop.permute.xlu1 %785 }
 0x18c   :  { %761 = vrot.lane.b32.xlu0 %v751_v37, %s2227_s19  ;;  %v796_v43 = vmax.f32 %v2499_v3, %v786_v38 }
 0x18d   :  { %v788_v40 = vpop.permute.xlu0 %787 }
 0x18e   :  { %759 = vrot.lane.b32.xlu1 %v750_v39, %s2227_s19  ;;  %v797_v41 = vmax.f32 %v2504_v5, %v788_v40 }
 0x18f   :  { %v832_v42 = vpop.permute.xlu1 %831 }
 0x190   :  { %807 = vrot.lane.b32.xlu0 %v797_v41, %s2228_s20  ;;  %v842_v49 = vmax.f32 %v2499_v3, %v832_v42 }
 0x191   :  { %v834_v44 = vpop.permute.xlu0 %833 }
 0x192   :  { %805 = vrot.lane.b32.xlu1 %v796_v43, %s2228_s20  ;;  %v843_v45 = vmax.f32 %v2504_v5, %v834_v44 }
 0x193   :  { %v878_v46 = vpop.permute.xlu1 %877 }
 0x194   :  { %853 = vrot.lane.b32.xlu0 %v843_v45, %s2229_s21  ;;  %v888_v58 = vmax.f32 %v2499_v3, %v878_v46 }
 0x195   :  { %v880_v51 = vpop.permute.xlu0 %879 }
 0x196   :  { %851 = vrot.lane.b32.xlu1 %v842_v49, %s2229_s21  ;;  %v889_v54 = vmax.f32 %v2504_v5, %v880_v51 }
 0x197   :  { %v744_v56 = vpop.permute.xlu1 %743 }
 0x198   :  { %899 = vrot.lane.b32.xlu0 %v889_v54, %s2230_s22  ;;  %v752_v2 = vmax.f32 %v2528_v6, %v744_v56  ;;  %v2666_v6 = vld [vmem:[%s2900_s3 + $0x40] sm:$0xff] }
 0x199   :  { %v616_v60 = vpop.permute.xlu0 %615  ;;  %2072 = vmatpush3.msra.mxu0 %v2666_v6 }
 0x19a   :  { %897 = vrot.lane.b32.xlu1 %v888_v58, %s2230_s22  ;;  %v627_v62 = vmax.f32 %v2482_v52, %v616_v60  ;;  %v2659_v52 = vld [vmem:[%s2900_s3 + $0x10] sm:$0xff]  ;;  %2073 = vmatprep.subr.mxu0 %v2231_v47 }
 0x19b   :  { %v790_v1 = vpop.permute.xlu1 %789  ;;  %2087 = vmatpush3.msra.mxu1 %v2659_v52  ;;  %2074 = vmatpush3.msra.mxu0 %v2681_v14 }
 0x19c   :  { %632 = vst.msk [vmem:[#allocation3] sm:$0xff] %vm631_vm3, %v627_v62  ;;  %v798_v15 = vmax.f32 %v2534_v7, %v790_v1  ;;  %2088 = vmatprep.subr.mxu1 %v2231_v47  ;;  %2095 = vmatprep.subr.mxu0 %v2231_v47 }
 0x19d   :  { %v620_v4 = vpop.permute.xlu0 %619  ;;  %2089 = vmatpush3.msra.mxu1 %v2674_v12 }
 0x19e   :  { %763 = vrot.lane.b32.xlu1 %v752_v2, %s2227_s19  ;;  %v629_v11 = vmax.f32 %v2504_v5, %v620_v4  ;;  %v2692_v5 = vld [vmem:[%s2900_s3] sm:$0xff]  ;;  %2090 = vmatprep.subr.mxu1 %v2231_v47 }
 0x19f   :  { %v836_v13 = vpop.permute.xlu1 %835  ;;  %2091 = vmatpush3.msra.mxu1 %v2692_v5 }
 0x1a0   :  { %634 = vst.msk [vmem:[#allocation3 + $0x10] sm:$0xff] %vm631_vm3, %v629_v11  ;;  %v844_v16 = vmax.f32 %v2540_v8, %v836_v13  ;;  %2112 = vmatprep.subr.mxu1 %v2231_v47 }
 0x1a2   :  { %809 = vrot.lane.b32.xlu1 %v798_v15, %s2228_s20 }
 0x1a3   :  { %v882_v7 = vpop.permute.xlu1 %881 }
 0x1a4   :  { %v890_v18 = vmax.f32 %v2544_v9, %v882_v7 }
 0x1a6   :  { %855 = vrot.lane.b32.xlu1 %v844_v16, %s2229_s21 }
 0x1a7   :  { %v622_v17 = vpop.permute.xlu1 %621 }
 0x1a8   :  { %v630_v19 = vmax.f32 %v2548_v10, %v622_v17 }
 0x1aa   :  { %636 = vst.msk [vmem:[#allocation3 + $0x18] sm:$0xf] %vm635_vm5, %v630_v19  ;;  %901 = vrot.lane.b32.xlu1 %v890_v18, %s2230_s22  ;;  %vm988_vm5 = vcmask 457728  }
 0x1ab   :  { %v618_v8 = vpop.permute.xlu1 %617 }
 0x1ac   :  { %v628_v20 = vmax.f32 %v2499_v3, %v618_v8 }
 0x1ae   :  { %633 = vst.msk [vmem:[#allocation3 + $0x8] sm:$0xff] %vm631_vm3, %v628_v20  ;;  %vm911_vm3 = vcmask 454016  }
 0x1dd   :  { %v666_v21 = vpop.permute.xlu0 %665 }
 0x1de   :  { %678 = vst.msk [vmem:[#allocation3] sm:$0xff] %vm677_vm6, %v666_v21 }
 0x1e1   :  { %v712_v22 = vpop.permute.xlu0 %711 }
 0x1e2   :  { %724 = vst.msk [vmem:[#allocation3] sm:$0xff] %vm723_vm7, %v712_v22 }
 0x1e5   :  { %v758_v9 = vpop.permute.xlu0 %757 }
 0x1e6   :  { %770 = vst.msk [vmem:[#allocation3] sm:$0xff] %vm769_vm8, %v758_v9 }
 0x1e9   :  { %v804_v10 = vpop.permute.xlu0 %803 }
 0x1ea   :  { %816 = vst.msk [vmem:[#allocation3] sm:$0xff] %vm815_vm9, %v804_v10 }
 0x1ed   :  { %v850_v3 = vpop.permute.xlu0 %849 }
 0x1ee   :  { %862 = vst.msk [vmem:[#allocation3] sm:$0xff] %vm861_vm10, %v850_v3 }
 0x1f0   :  { %v672_v23 = vpop.permute.xlu1 %671 }
 0x1f1   :  { %682 = vst.msk [vmem:[#allocation3 + $0x18] sm:$0xf] %vm681_vm11, %v672_v23  ;;  %v896_v24 = vpop.permute.xlu0 %895  ;;  %vm1539_vm11 = vcmask 516352  }
 0x1f2   :  { %908 = vst.msk [vmem:[#allocation3] sm:$0xff] %vm907_vm12, %v896_v24 }
 0x1f4   :  { %v718_v25 = vpop.permute.xlu1 %717 }
 0x1f5   :  { %728 = vst.msk [vmem:[#allocation3 + $0x18] sm:$0xf] %vm727_vm13, %v718_v25 }
 0x1f6   :  { %v670_v26 = vpop.permute.xlu0 %669 }
 0x1f7   :  { %680 = vst.msk [vmem:[#allocation3 + $0x10] sm:$0xff] %vm677_vm6, %v670_v26 }
 0x1f8   :  { %v668_v27 = vpop.permute.xlu1 %667 }
 0x1f9   :  { %v913_v28 = vld [vmem:[#allocation3] sm:$0x1]  ;;  %v914_v29 = vld [vmem:[#allocation3 + $0x1] sm:$0x1]  ;;  %v918_v30 = vld [vmem:[#allocation3 + $0x2] sm:$0x1] }
 0x1fa   :  { %679 = vst.msk [vmem:[#allocation3 + $0x8] sm:$0xff] %vm677_vm6, %v668_v27  ;;  %v915_v31 = vmax.f32 %v913_v28, %v914_v29  ;;  %v919_v32 = vld [vmem:[#allocation3 + $0x3] sm:$0x1]  ;;  %v922_v33 = vld [vmem:[#allocation3 + $0x4] sm:$0x1]  ;;  %v716_v35 = vpop.permute.xlu0 %715  ;;  %vm1226_vm6 = vcmask 651264  }
 0x1fb   :  { %v923_v34 = vld [vmem:[#allocation3 + $0x5] sm:$0x1]  ;;  %v920_v36 = vmax.f32 %v918_v30, %v919_v32  ;;  %v926_v38 = vld [vmem:[#allocation3 + $0x6] sm:$0x1]  ;;  %v927_v39 = vld [vmem:[#allocation3 + $0x7] sm:$0x1] }
 0x1fc   :  { %v924_v37 = vmax.f32 %v922_v33, %v923_v34  ;;  %726 = vst.msk [vmem:[#allocation3 + $0x10] sm:$0xff] %vm723_vm7, %v716_v35  ;;  %v928_v40 = vmax.f32 %v926_v38, %v927_v39  ;;  %v714_v41 = vpop.permute.xlu1 %713  ;;  %v1801_v30 = vld [vmem:[%s2900_s3 + $0xa0] sm:$0xff]  ;;  %v1800_v32 = vld [vmem:[%s2900_s3 + $0x98] sm:$0xff]  ;;  %v1799_v33 = vld [vmem:[%s2900_s3 + $0x90] sm:$0xff] }
 0x1fd   :  { %917 = vst.msk [vmem:[#allocation4] sm:$0x1] %vm916_vm14, %v915_v31  ;;  %921 = vst.msk [vmem:[#allocation4 + $0x1] sm:$0x1] %vm916_vm14, %v920_v36  ;;  %v1798_v34 = vld [vmem:[%s2900_s3 + $0x88] sm:$0xff]  ;;  %v1797_v39 = vld [vmem:[%s2900_s3 + $0x80] sm:$0xff] }
 0x1fe   :  { %925 = vst.msk [vmem:[#allocation4 + $0x2] sm:$0x1] %vm916_vm14, %v924_v37  ;;  %929 = vst.msk [vmem:[#allocation4 + $0x3] sm:$0x1] %vm916_vm14, %v928_v40  ;;  %v762_v42 = vpop.permute.xlu0 %761 }
 0x1ff   :  { %725 = vst.msk [vmem:[#allocation3 + $0x8] sm:$0xff] %vm723_vm7, %v714_v41  ;;  %vm1487_vm7 = vcmask 130048  }
 0x200   :  { %772 = vst.msk [vmem:[#allocation3 + $0x10] sm:$0xff] %vm769_vm8, %v762_v42  ;;  %v760_v43 = vpop.permute.xlu1 %759 }
 0x201   :  { %771 = vst.msk [vmem:[#allocation3 + $0x8] sm:$0xff] %vm769_vm8, %v760_v43  ;;  %vm1513_vm8 = vcmask 255104  }
 0x202   :  { %v808_v44 = vpop.permute.xlu0 %807 }
 0x203   :  { %818 = vst.msk [vmem:[#allocation3 + $0x10] sm:$0xff] %vm815_vm9, %v808_v44 }
 0x204   :  { %v806_v45 = vpop.permute.xlu1 %805 }
 0x205   :  { %817 = vst.msk [vmem:[#allocation3 + $0x8] sm:$0xff] %vm815_vm9, %v806_v45  ;;  %vm1511_vm9 = vcmask 261248  }
 0x206   :  { %v854_v46 = vpop.permute.xlu0 %853 }
 0x207   :  { %864 = vst.msk [vmem:[#allocation3 + $0x10] sm:$0xff] %vm861_vm10, %v854_v46 }
 0x208   :  { %v852_v49 = vpop.permute.xlu1 %851 }
 0x209   :  { %863 = vst.msk [vmem:[#allocation3 + $0x8] sm:$0xff] %vm861_vm10, %v852_v49  ;;  %vm1518_vm10 = vcmask 253952  }
 0x20a   :  { %v900_v51 = vpop.permute.xlu0 %899 }
 0x20b   :  { %910 = vst.msk [vmem:[#allocation3 + $0x10] sm:$0xff] %vm907_vm12, %v900_v51 }
 0x20c   :  { %v898_v54 = vpop.permute.xlu1 %897 }
 0x20d   :  { %909 = vst.msk [vmem:[#allocation3 + $0x8] sm:$0xff] %vm907_vm12, %v898_v54  ;;  %vm1725_vm12 = vcmask 74752  }
 0x210   :  { %v764_v56 = vpop.permute.xlu1 %763 }
 0x211   :  { %774 = vst.msk [vmem:[#allocation3 + $0x18] sm:$0xf] %vm773_vm15, %v764_v56 }
 0x212   :  { %v946_v58 = vld [vmem:[#allocation3 + $0x10] sm:$0x1]  ;;  %v947_v60 = vld [vmem:[#allocation3 + $0x11] sm:$0x1]  ;;  %v950_v62 = vld [vmem:[#allocation3 + $0x12] sm:$0x1] }
 0x213   :  { %v948_v1 = vmax.f32 %v946_v58, %v947_v60  ;;  %v951_v2 = vld [vmem:[#allocation3 + $0x13] sm:$0x1]  ;;  %v954_v4 = vld [vmem:[#allocation3 + $0x14] sm:$0x1]  ;;  %v955_v11 = vld [vmem:[#allocation3 + $0x15] sm:$0x1] }
 0x214   :  { %v930_v13 = vld [vmem:[#allocation3 + $0x8] sm:$0x1]  ;;  %v931_v15 = vld [vmem:[#allocation3 + $0x9] sm:$0x1]  ;;  %v934_v7 = vld [vmem:[#allocation3 + $0xa] sm:$0x1]  ;;  %v952_v16 = vmax.f32 %v950_v62, %v951_v2  ;;  %v956_v17 = vmax.f32 %v954_v4, %v955_v11  ;;  %v810_v18 = vpop.permute.xlu1 %809 }
 0x215   :  { %v932_v19 = vmax.f32 %v930_v13, %v931_v15  ;;  %v935_v8 = vld [vmem:[#allocation3 + $0xb] sm:$0x1]  ;;  %v938_v20 = vld [vmem:[#allocation3 + $0xc] sm:$0x1]  ;;  %v939_v21 = vld [vmem:[#allocation3 + $0xd] sm:$0x1] }
 0x216   :  { %949 = vst.msk [vmem:[#allocation4 + $0x8] sm:$0x1] %vm916_vm14, %v948_v1  ;;  %v936_v22 = vmax.f32 %v934_v7, %v935_v8  ;;  %v940_v9 = vmax.f32 %v938_v20, %v939_v21  ;;  %v942_v10 = vld [vmem:[#allocation3 + $0xe] sm:$0x1]  ;;  %v943_v3 = vld [vmem:[#allocation3 + $0xf] sm:$0x1] }
 0x217   :  { %820 = vst.msk [vmem:[#allocation3 + $0x18] sm:$0xf] %vm819_vm1, %v810_v18  ;;  %v958_v23 = vld [vmem:[#allocation3 + $0x16] sm:$0x1]  ;;  %v944_v24 = vmax.f32 %v942_v10, %v943_v3  ;;  %v959_v25 = vld [vmem:[#allocation3 + $0x17] sm:$0x1] }
 0x218   :  { %953 = vst.msk [vmem:[#allocation4 + $0x9] sm:$0x1] %vm916_vm14, %v952_v16  ;;  %957 = vst.msk [vmem:[#allocation4 + $0xa] sm:$0x1] %vm916_vm14, %v956_v17  ;;  %v960_v26 = vmax.f32 %v958_v23, %v959_v25  ;;  %v856_v27 = vpop.permute.xlu1 %855  ;;  %v1557_v20 = vld [vmem:[%s2902_s5 + $0x38] sm:$0xff]  ;;  %v1556_v21 = vld [vmem:[%s2902_s5 + $0x30] sm:$0xff] }
 0x219   :  { %933 = vst.msk [vmem:[#allocation4 + $0x4] sm:$0x1] %vm916_vm14, %v932_v19  ;;  %937 = vst.msk [vmem:[#allocation4 + $0x5] sm:$0x1] %vm916_vm14, %v936_v22  ;;  %v1555_v22 = vld [vmem:[%s2902_s5 + $0x28] sm:$0xff] }
 0x21a   :  { %941 = vst.msk [vmem:[#allocation4 + $0x6] sm:$0x1] %vm916_vm14, %v940_v9  ;;  %945 = vst.msk [vmem:[#allocation4 + $0x7] sm:$0x1] %vm916_vm14, %v944_v24  ;;  %v1554_v9 = vld [vmem:[%s2902_s5 + $0x20] sm:$0xff] }
 0x21b   :  { %866 = vst.msk [vmem:[#allocation3 + $0x18] sm:$0xf] %vm865_vm2, %v856_v27 }
 0x21c   :  { %961 = vst.msk [vmem:[#allocation4 + $0xb] sm:$0x1] %vm916_vm14, %v960_v26  ;;  %v902_v28 = vpop.permute.xlu1 %901 }
 0x21d   :  { %912 = vst.msk [vmem:[#allocation3 + $0x18] sm:$0xf] %vm911_vm3, %v902_v28 }
 0x220   :  { %v971_v29 = vld [vmem:[#allocation4] sm:$0x1f] }
 0x221   :  { %v979_v31 = vld [vmem:[#allocation4 + $0x1] sm:$0x1f]  ;;  %2093 = vmatmul.mubr.msk.f32.vlgmr.msra.gmra.mxu1 %vm988_vm5, %v971_v29 }
 0x222   :  { %2076 = vmatmul.mubr.msk.f32.vlgmr.msra.gmra.mxu0 %vm988_vm5, %v979_v31  ;;  %2113 = vmatpush3.msra.mxu1 %v2589_v48 }
 0x223   :  { %2096 = vmatpush3.msra.mxu0 %v1801_v30  ;;  %2114 = vmatprep.subr.mxu1 %v2231_v47 }
 0x224   :  { %2097 = vmatprep.subr.mxu0 %v2231_v47  ;;  %2115 = vmatpush3.msra.mxu1 %v2605_v53  ;;  %v962_v35 = vld [vmem:[#allocation3 + $0x18] sm:$0x1]  ;;  %v963_v48 = vld [vmem:[#allocation3 + $0x19] sm:$0x1]  ;;  %v966_v36 = vld [vmem:[#allocation3 + $0x1a] sm:$0x1] }
 0x225   :  { %2098 = vmatpush3.msra.mxu0 %v1800_v32  ;;  %2116 = vmatprep.subr.mxu1 %v2231_v47  ;;  %v964_v37 = vmax.f32 %v962_v35, %v963_v48  ;;  %v967_v38 = vld [vmem:[#allocation3 + $0x1b] sm:$0x1]  ;;  %v1552_v48 = vld [vmem:[%s2902_s5 + $0x10] sm:$0xff] }
 0x226   :  { %2099 = vmatprep.subr.mxu0 %v2231_v47  ;;  %2117 = vmatpush3.msra.mxu1 %v2620_v57  ;;  %v968_v53 = vmax.f32 %v966_v36, %v967_v38  ;;  %v1796_v57 = vld [vmem:[%s2900_s3 + $0x78] sm:$0xff]  ;;  %v1551_v36 = vld [vmem:[%s2902_s5 + $0x8] sm:$0xff] }
 0x227   :  { %2100 = vmatpush3.msra.mxu0 %v1799_v33  ;;  %2118 = vmatprep.subr.mxu1 %v2231_v47  ;;  %965 = vst.msk [vmem:[#allocation4 + $0xc] sm:$0x1] %vm916_vm14, %v964_v37  ;;  %v1550_v37 = vld [vmem:[%s2902_s5] sm:$0xff]  ;;  %v1642_v38 = vld [vmem:[%s2904_s7 + $0x18] sm:$0xff] }
 0x228   :  { %2101 = vmatprep.subr.mxu0 %v2231_v47  ;;  %2119 = vmatpush3.msra.mxu1 %v2635_v61  ;;  %969 = vst.msk [vmem:[#allocation4 + $0xd] sm:$0x1] %vm916_vm14, %v968_v53  ;;  %v1795_v61 = vld [vmem:[%s2900_s3 + $0x70] sm:$0xff] }
 0x229   :  { %2102 = vmatpush3.msra.mxu0 %v1798_v34  ;;  %2120 = vmatprep.subr.mxu1 %v2231_v47 }
 0x22a   :  { %2103 = vmatprep.subr.mxu0 %v2231_v47  ;;  %2121 = vmatpush3.msra.mxu1 %v2648_v0  ;;  %v1135_v0 = vld [vmem:[#allocation4 + $0x2] sm:$0x1f] }
 0x22b   :  { %2104 = vmatpush3.msra.mxu0 %v1797_v39  ;;  %2122 = vmatprep.subr.mxu1 %v2231_v47 }
 0x22c   :  { %2105 = vmatprep.subr.mxu0 %v2231_v47  ;;  %2109 = vmatprep.mubr.msk.f32.mxu0 %vm2232_vm4, %v2231_v47 }
 0x22d   :  { %2106 = vmatpush3.msra.mxu0 %v1796_v57  ;;  %2123 = vmatpush3.msra.mxu1 %v2666_v6 }
 0x22e   :  { %2107 = vmatprep.subr.mxu0 %v2231_v47  ;;  %2124 = vmatprep.subr.mxu1 %v2231_v47  ;;  %v1236_v40 = vld [vmem:[#allocation4 + $0x8] sm:$0x1f] }
 0x22f   :  { %2108 = vmatpush3.msra.mxu0 %v1795_v61  ;;  %2125 = vmatpush3.msra.mxu1 %v2681_v14  ;;  %v1803_v14 = vld [vmem:[%s2901_s4] ss:$0 sm:$0xff] }
 0x230   :  { %2110 = vmatmul.mubr.msk.f32.vlgmr.msra.gmra.mxu0 %vm988_vm5, %v1135_v0  ;;  %2129 = vmatprep.subr.mxu0 %v2231_v47 }
 0x231   :  { %2130 = vmatpush3.msra.mxu0 %v2598_v50  ;;  %2126 = vmatprep.mubr.msk.f32.mxu1 %vm2232_vm4, %v2231_v47  ;;  %v1228_v50 = vld [vmem:[#allocation4 + $0x7] sm:$0x1f] }
 0x232   :  { %2131 = vmatprep.subr.mxu0 %v2231_v47  ;;  %2146 = vmatprep.subr.mxu1 %v2231_v47 }
 0x233   :  { %2127 = vmatmul.mubr.msk.f32.vlgmr.msra.gmra.mxu1 %vm988_vm5, %v1236_v40  ;;  %2132 = vmatpush3.msra.mxu0 %v2613_v55  ;;  %v1390_v55 = vld [vmem:[#allocation4 + $0x9] sm:$0x1f] }
 0x234   :  { %2147 = vmatpush3.msra.mxu1 %v1801_v30  ;;  %2133 = vmatprep.subr.mxu0 %v2231_v47 }
 0x235   :  { %2148 = vmatprep.subr.mxu1 %v2231_v47  ;;  %2134 = vmatpush3.msra.mxu0 %v2628_v59 }
 0x236   :  { %2149 = vmatpush3.msra.mxu1 %v1800_v32  ;;  %2135 = vmatprep.subr.mxu0 %v2231_v47 }
 0x237   :  { %2150 = vmatprep.subr.mxu1 %v2231_v47  ;;  %2136 = vmatpush3.msra.mxu0 %v2643_v63 }
 0x238   :  { %2151 = vmatpush3.msra.mxu1 %v1799_v33  ;;  %2137 = vmatprep.subr.mxu0 %v2231_v47  ;;  %v1553_v33 = vld [vmem:[%s2902_s5 + $0x18] sm:$0xff] }
 0x239   :  { %2152 = vmatprep.subr.mxu1 %v2231_v47  ;;  %2138 = vmatpush3.msra.mxu0 %v2659_v52 }
 0x23a   :  { %2153 = vmatpush3.msra.mxu1 %v1798_v34  ;;  %2139 = vmatprep.subr.mxu0 %v2231_v47 }
 0x23b   :  { %2154 = vmatprep.subr.mxu1 %v2231_v47  ;;  %2140 = vmatpush3.msra.mxu0 %v2674_v12 }
 0x23c   :  { %2155 = vmatpush3.msra.mxu1 %v1797_v39  ;;  %2141 = vmatprep.subr.mxu0 %v2231_v47 }
 0x23d   :  { %2156 = vmatprep.subr.mxu1 %v2231_v47  ;;  %2142 = vmatpush3.msra.mxu0 %v2692_v5 }
 0x23e   :  { %2143 = vmatprep.mubr.msk.f32.mxu0 %vm2232_vm4, %v2231_v47  ;;  %2157 = vmatpush3.msra.mxu1 %v1796_v57 }
 0x23f   :  { %2144 = vmatmul.mubr.msk.f32.vlgmr.msra.gmra.mxu0 %vm988_vm5, %v1228_v50  ;;  %2158 = vmatprep.subr.mxu1 %v2231_v47 }
 0x240   :  { %2159 = vmatpush3.msra.mxu1 %v1795_v61  ;;  %2160 = vmatprep.mubr.msk.f32.mxu1 %vm2232_vm4, %v2231_v47 }
 0x241   :  { %2161 = vmatmul.mubr.msk.f32.vlgmr.msra.gmra.mxu1 %vm988_vm5, %v1390_v55  ;;  %2163 = vmatprep.subr.mxu0 %v2231_v47  ;;  %v1641_v55 = vld [vmem:[%s2904_s7 + $0x10] sm:$0xff] }
 0x242   :  { %2179 = vmatprep.mubr.msk.f32.mxu0 %vm2232_vm4, %v2231_v47  ;;  %2182 = vmatprep.subr.mxu1 %v2231_v47 }
 0x243   :  { %2190 = vmatprep.mubr.msk.f32.mxu1 %vm2232_vm4, %v2231_v47  ;;  %vm1489_vm4 = vcmask 123904   ;;  %2164 = vmatpush3.msra.mxu0 %v1557_v20 }
 0x244   :  { %2165 = vmatprep.subr.mxu0 %v2231_v47  ;;  %2183 = vmatpush3.msra.mxu1 %v1642_v38 }
 0x245   :  { %2166 = vmatpush3.msra.mxu0 %v1556_v21  ;;  %2184 = vmatprep.subr.mxu1 %v2231_v47 }
 0x246   :  { %2167 = vmatprep.subr.mxu0 %v2231_v47  ;;  %2185 = vmatpush3.msra.mxu1 %v1641_v55 }
 0x247   :  { %2168 = vmatpush3.msra.mxu0 %v1555_v22  ;;  %2186 = vmatprep.subr.mxu1 %v2231_v47 }
 0x248   :  { %2169 = vmatprep.subr.mxu0 %v2231_v47 }
 0x249   :  { %2170 = vmatpush3.msra.mxu0 %v1554_v9 }
 0x24a   :  { %2171 = vmatprep.subr.mxu0 %v2231_v47 }
 0x24b   :  { %2172 = vmatpush3.msra.mxu0 %v1553_v33 }
 0x24c   :  { %2173 = vmatprep.subr.mxu0 %v2231_v47 }
 0x24d   :  { %2174 = vmatpush3.msra.mxu0 %v1552_v48 }
 0x24e   :  { %2175 = vmatprep.subr.mxu0 %v2231_v47 }
 0x24f   :  { %2176 = vmatpush3.msra.mxu0 %v1551_v36 }
 0x250   :  { %2177 = vmatprep.subr.mxu0 %v2231_v47 }
 0x251   :  { %2178 = vmatpush3.msra.mxu0 %v1550_v37 }
 0x2e1   :  { %v1131_v59 = vpop.f32.mrf.mxu1 }
 0x2e2   :  { %v1058_v63 = vpop.f32.mrf.mxu0 }
 0x2e3   :  { %v2094_v52 = vpop.f32.mrf.mxu1  ;;  %v1132_v12 = vadd.f32 %v1131_v59, %v1058_v63  ;;  %v1640_v59 = vld [vmem:[%s2904_s7 + $0x8] sm:$0xff]  ;;  %v1639_v63 = vld [vmem:[%s2904_s7] sm:$0xff] }
 0x2e4   :  { %v2077_v6 = vpop.f32.mrf.mxu0  ;;  %2187 = vmatpush3.msra.mxu1 %v1640_v59  ;;  %v1821_v52 = vld [vmem:[%s2903_s6] ss:$0 sm:$0xff]  ;;  %s2203_s6 = scalar_lea.vmem %s1734_s26, 32 }
 0x2e5   :  { %2188 = vmatprep.subr.mxu1 %v2231_v47  ;;  %p2204_p0 = scmp.ne.s32.totalorder %s1734_s26, %s2203_s6  ;;  %p2209_p2 = scmp.lt.s32.totalorder %s2203_s6, %s2203_s6 }
 0x2e6   :  { %2189 = vmatpush3.msra.mxu1 %v1639_v63 }
 0x2e7   :  { %p2210_p3 = por %p2209_p2, %p2208_p1 }
 0x2e9   :  { %p2211_p4 = pnand %p2210_p3, %p2204_p0 }
 0x2f0   :  { %v1213_v5 = vpop.f32.mrf.mxu0 }
 0x2f1   :  { %v1217_v41 = vadd.f32 %v1213_v5, %v1132_v12 }
 0x2f2   :  { %v2111_v42 = vpop.f32.mrf.mxu0 }
 0x2f3   :  { %v1224_v43 = vadd.f32 %v1803_v14, %v1217_v41  ;;  %v1313_v44 = vpop.f32.mrf.mxu1  ;;  %v1823_v41 = vld [vmem:[%s2905_s8] ss:$0 sm:$0xff] }
 0x2f5   :  { %v1225_v45 = vmax.f32 %v1224_v43, 0.0  ;;  %v2128_v46 = vpop.f32.mrf.mxu1 }
 0x2f7   :  { %1227 = vst.msk [vmem:[#allocation5] sm:$0x1f] %vm1226_vm6, %v1225_v45 }
 0x2ff   :  { %v1386_v49 = vpop.f32.mrf.mxu0 }
 0x300   :  { %v1387_v51 = vadd.f32 %v1386_v49, %v1313_v44 }
 0x301   :  { %v2145_v54 = vpop.f32.mrf.mxu0  ;;  %v1467_v56 = vpop.f32.mrf.mxu1 }
 0x302   :  { %v1471_v58 = vadd.f32 %v1467_v56, %v1387_v51 }
 0x303   :  { %v2162_v60 = vpop.f32.mrf.mxu1 }
 0x304   :  { %v1472_v62 = vadd.f32 %v1803_v14, %v1471_v58 }
 0x306   :  { %v1473_v1 = vmax.f32 %v1472_v62, 0.0 }
 0x308   :  { %1474 = vst.msk [vmem:[#allocation5 + $0x5] sm:$0x1f] %vm1226_vm6, %v1473_v1 }
 0x30f   :  { %v1492_v2 = vld [vmem:[#allocation5 + $0x8] sm:$0x3]  ;;  %v1491_v4 = vld [vmem:[#allocation5] sm:$0xff] }
 0x310   :  { %1497 = vrot.lane.b32.xlu1 %v1492_v2, %s2226_s2  ;;  %1495 = vrot.lane.b32.xlu0 %v1491_v4, %s2226_s2  ;;  %v1476_v11 = vld [vmem:[#allocation5 + $0x8] sm:$0x3] }
 0x314   :  { %1481 = vrot.lane.b32.xlu1 %v1476_v11, %s2226_s2  ;;  %1479 = vrot.lane.b32.xlu0 %v1491_v4, %s2226_s2 }
 0x382   :  { %v1498_v13 = vpop.permute.xlu1 %1497  ;;  %v1496_v15 = vpop.permute.xlu0 %1495 }
 0x383   :  { %v1502_v7 = vmax.f32 %v1492_v2, %v1498_v13  ;;  %v1501_v16 = vmax.f32 %v1491_v4, %v1496_v15 }
 0x385   :  { %1507 = vrot.lane.b32.xlu1 %v1502_v7, %s2226_s2  ;;  %1505 = vrot.lane.b32.xlu0 %v1501_v16, %s2226_s2 }
 0x386   :  { %v1482_v17 = vpop.permute.xlu1 %1481  ;;  %v1480_v18 = vpop.permute.xlu0 %1479 }
 0x387   :  { %v1486_v19 = vmax.f32 %v1476_v11, %v1482_v17  ;;  %v1485_v8 = vmax.f32 %v1491_v4, %v1480_v18 }
 0x389   :  { %1490 = vst.msk [vmem:[#allocation6 + $0x8] sm:$0x3] %vm1489_vm4, %v1486_v19 }
 0x38a   :  { %1488 = vst.msk [vmem:[#allocation6] sm:$0xff] %vm1487_vm7, %v1485_v8 }
 0x3f7   :  { %v1508_v10 = vpop.permute.xlu1 %1507  ;;  %v1506_v3 = vpop.permute.xlu0 %1505 }
 0x3f8   :  { %1514 = vst.msk [vmem:[#allocation6 + $0x8] sm:$0x3] %vm1513_vm8, %v1508_v10 }
 0x3f9   :  { %1512 = vst.msk [vmem:[#allocation6] sm:$0xff] %vm1511_vm9, %v1506_v3 }
 0x3ff   :  { %v1529_v23 = vld [vmem:[#allocation6 + $0x8] sm:$0x1] }
 0x400   :  { %v1515_v24 = vld [vmem:[#allocation6] sm:$0x1]  ;;  %v1516_v25 = vld [vmem:[#allocation6 + $0x1] sm:$0x1]  ;;  %v1520_v27 = vld [vmem:[#allocation6 + $0x2] sm:$0x1] }
 0x401   :  { %v1517_v26 = vmax.f32 %v1515_v24, %v1516_v25  ;;  %v1521_v28 = vld [vmem:[#allocation6 + $0x3] sm:$0x1]  ;;  %v1524_v29 = vld [vmem:[#allocation6 + $0x5] sm:$0x1]  ;;  %v1525_v31 = vld [vmem:[#allocation6 + $0x6] sm:$0x1] }
 0x402   :  { %v1522_v30 = vmax.f32 %v1520_v27, %v1521_v28  ;;  %v1528_v32 = vld [vmem:[#allocation6 + $0x7] sm:$0x1]  ;;  %v1526_v34 = vmax.f32 %v1524_v29, %v1525_v31 }
 0x403   :  { %1519 = vst.msk [vmem:[#allocation7] sm:$0x1] %vm1518_vm10, %v1517_v26  ;;  %v1530_v35 = vmax.f32 %v1528_v32, %v1529_v23 }
 0x404   :  { %1523 = vst.msk [vmem:[#allocation7 + $0x1] sm:$0x1] %vm1518_vm10, %v1522_v30  ;;  %1527 = vst.msk [vmem:[#allocation7 + $0x2] sm:$0x1] %vm1518_vm10, %v1526_v34 }
 0x405   :  { %1531 = vst.msk [vmem:[#allocation7 + $0x3] sm:$0x1] %vm1518_vm10, %v1530_v35 }
 0x40a   :  { %v1532_v53 = vld [vmem:[#allocation7] sm:$0x1] }
 0x40b   :  { %v1534_v39 = vld [vmem:[#allocation7 + $0x1] sm:$0x1]  ;;  %1533 = vst.msk [vmem:[#allocation8] sm:$0x1] %vm1518_vm10, %v1532_v53  ;;  %v1541_v61 = vld [vmem:[#allocation7 + $0x2] sm:$0x1] }
 0x40c   :  { %v1543_v57 = vld [vmem:[#allocation7 + $0x3] sm:$0x1]  ;;  %1536 = vrot.lane.b32.xlu0 %v1534_v39, %s2233_s14  ;;  %1542 = vst.msk [vmem:[#allocation8 + $0x1] sm:$0x1] %vm1518_vm10, %v1541_v61 }
 0x40d   :  { %1545 = vrot.lane.b32.xlu1 %v1543_v57, %s2233_s14 }
 0x47e   :  { %v1537_v0 = vpop.permute.xlu0 %1536 }
 0x47f   :  { %v1546_v40 = vpop.permute.xlu1 %1545  ;;  %1540 = vst.msk [vmem:[#allocation8] sm:$0x1] %vm1539_vm11, %v1537_v0 }
 0x480   :  { %1548 = vst.msk [vmem:[#allocation8 + $0x1] sm:$0x1] %vm1539_vm11, %v1546_v40 }
 0x487   :  { %v1549_v50 = vld [vmem:[#allocation8] sm:$0x3] }
 0x488   :  { %2180 = vmatmul.mubr.msk.f32.vlgmr.msra.gmra.mxu0 %vm55_vm0, %v1549_v50  ;;  %vm1650_vm0 = vcmask 261120  }
 0x548   :  { %v1634_v6 = vpop.f32.mrf.mxu0 }
 0x549   :  { %v1635_v12 = vadd.f32 %v1821_v52, %v1634_v6 }
 0x54a   :  { %v2181_v14 = vpop.f32.mrf.mxu0 }
 0x54b   :  { %v1638_v5 = vmax.f32 %v1635_v12, 0.0 }
 0x54d   :  { %2191 = vmatmul.mubr.msk.f32.vlgmr.msra.gmra.mxu1 %vm1650_vm0, %v1638_v5 }
 0x60d   :  { %v1720_v47 = vpop.f32.mrf.mxu1 }
 0x60e   :  { %v1721_v42 = vadd.f32 %v1823_v41, %v1720_v47 }
 0x60f   :  { %v2192_v43 = vpop.f32.mrf.mxu1 }
 0x610   :  { %v1724_v44 = vmax.f32 %v1721_v42, 0.0 }
 0x612   :  { %1726 = vst.msk [vmem:[#allocation9] sm:$0x3] %vm1725_vm12, %v1724_v44 }
 0x613   :  { %2214 = shalt.err (!%p2211_p4)
}
 0x614   :  { %1736 = dma.vmem_to_hbm [thread:$0]  %s1734_s26, 32, %s2906_s9, [#allocation10]  }
 0x615   :  { %2223 = dma.done.wait [#allocation10], 32  }
 0x616   :  { %2224 = vsyncadd [#allocation10], 4294967264 }
 0x617   :  { %1740 = vsyncpa [#allocation10], 1 }

</bundles_post_ra>
